<compile_context>
chip_gen: v6e
topology: v6e:2x2x1
jax: 0.10.0
libtpu: 0.0.40
codegen_flags: <defaults>
</compile_context>

<pallas_src>
import functools

import jax
import jax.numpy as jnp
from jax.experimental import pallas as pl
from jax.experimental.pallas import tpu as pltpu

_LANE = 128
_SUBLANE = 8
_T_BLK_MAX = 8


def _round_up(x, m):
    return ((x + m - 1) // m) * m


def _vmem_limit_bytes():
    """Chip-aware scoped-VMEM budget (None -> leave the compiler default)."""
    try:
        kind = jax.devices()[0].device_kind.lower()
    except Exception:
        return None
    if "v7" in kind:
        return 48 * 1024 * 1024          # 64 MiB physical per TC on v7x
    if any(v in kind for v in ("v4", "v5", "v6")):
        return 96 * 1024 * 1024          # 128 MiB physical
    return None


_VMEM_LIMIT = _vmem_limit_bytes()


def _compiler_params(dimension_semantics):
    kw = dict(dimension_semantics=dimension_semantics)
    if _VMEM_LIMIT is not None:
        kw["vmem_limit_bytes"] = _VMEM_LIMIT
    return pltpu.CompilerParams(**kw)


# ----------------------------------------------------------------------------
# Parameter padding helpers (gate k occupies lanes [k*hp, k*hp + H)).
# ----------------------------------------------------------------------------
def _pad_gates_cols(w_t, hp):
    """w_t: (D, 4H) -> (D, 4*hp); each gate's H cols left-aligned in its hp span."""
    d, four_h = w_t.shape
    h = four_h // 4
    w4 = w_t.reshape(d, 4, h)
    out = jnp.zeros((d, 4, hp), w_t.dtype).at[:, :, :h].set(w4)
    return out.reshape(d, 4 * hp)


def _pad_lstm_params(w_ih, w_hh, b_ih, b_hh, hp, d_in_pad):
    """PyTorch-layout LSTM params -> kernel layout.

    Returns (wih_t, whh_t, bias):
      wih_t : (d_in_pad, 4*hp) bf16
      whh_t : (hp, 4*hp)       bf16
      bias  : (4*hp,)          f32   (b_ih + b_hh, gate-padded with zeros)
    Zero padding keeps the padded hidden/cell lanes exactly 0 for all steps.
    """
    h = w_hh.shape[1]
    wih_t = _pad_gates_cols(jnp.asarray(w_ih, jnp.float32).T, hp)
    if d_in_pad != wih_t.shape[0]:
        wih_t = jnp.zeros((d_in_pad, 4 * hp), jnp.float32).at[:wih_t.shape[0]].set(wih_t)
    whh_t = _pad_gates_cols(jnp.asarray(w_hh, jnp.float32).T, hp)
    whh_t = jnp.zeros((hp, 4 * hp), jnp.float32).at[:h].set(whh_t)
    bias = _pad_gates_cols(
        (jnp.asarray(b_ih, jnp.float32) + jnp.asarray(b_hh, jnp.float32))[None, :], hp)[0]
    return wih_t.astype(jnp.bfloat16), whh_t.astype(jnp.bfloat16), bias


# ----------------------------------------------------------------------------
# Pallas kernel 1: batched linear  Y = X @ W + b  (bf16 MXU, f32 accumulate).
# Used for the hoisted input projections (bf16 out) and the classifier (f32).
# ----------------------------------------------------------------------------
def _linear_kernel(x_ref, w_ref, b_ref, o_ref):
    acc = jnp.dot(x_ref[...].astype(jnp.bfloat16), w_ref[...],
                  preferred_element_type=jnp.float32) + b_ref[...]
    o_ref[...] = acc.astype(o_ref.dtype)


def _linear(x, w_t, bias, out_dtype=jnp.float32):
    """x: (M, K) bf16/f32, w_t: (K, N) bf16, bias: (N,) f32 -> (M, N) out_dtype."""
    m, k = x.shape
    n = w_t.shape[1]
    tm_cap = 1024 if (_VMEM_LIMIT or 0) >= 96 * 1024 * 1024 else 512
    tm = min(tm_cap, _round_up(m, _SUBLANE))
    mp = _round_up(m, tm)
    x_p = x if mp == m else jnp.zeros((mp, k), x.dtype).at[:m].set(x)
    out = pl.pallas_call(
        _linear_kernel,
        out_shape=jax.ShapeDtypeStruct((mp, n), out_dtype),
        grid_spec=pltpu.PrefetchScalarGridSpec(
            num_scalar_prefetch=0,
            grid=(mp // tm,),
            in_specs=[
                pl.BlockSpec((tm, k), lambda i: (i, 0)),
                # Loop-invariant weight / bias: single pipeline buffer.
                pl.BlockSpec((k, n), lambda i: (0, 0), pipeline_mode=pl.Buffered(1)),
                pl.BlockSpec((1, n), lambda i: (0, 0), pipeline_mode=pl.Buffered(1)),
            ],
            out_specs=pl.BlockSpec((tm, n), lambda i: (i, 0)),
        ),
        compiler_params=_compiler_params(("parallel",)),
    )(x_p, w_t, bias.reshape(1, n).astype(jnp.float32))
    return out[:m]


# ----------------------------------------------------------------------------
# Pallas kernel 2: recurrent LSTM layer (rolling / OpenLSTM).
# Grid = (batch_blocks [parallel], time_blocks [arbitrary]); the hoisted bf16
# pre-gates (x @ W_ih^T + b) are streamed in, only h @ W_hh^T is recurrent.
# ----------------------------------------------------------------------------
def _lstm_recurrent_kernel(pre_ref, whh_ref, hid_ref, cell_ref, h_sc, c_sc,
                           *, hp, t_blk):
    tb = pl.program_id(1)

    @pl.when(tb == 0)
    def _():
        h_sc[...] = jnp.zeros_like(h_sc)
        c_sc[...] = jnp.zeros_like(c_sc)

    w = whh_ref[...]                       # (hp, 4*hp) bf16, single-buffered

    def step(s, carry):
        h, c = carry
        gates = (pre_ref[s].astype(jnp.float32)
                 + jnp.dot(h.astype(jnp.bfloat16), w,
                           preferred_element_type=jnp.float32))
        i_g = jax.nn.sigmoid(gates[:, 0 * hp:1 * hp])
        f_g = jax.nn.sigmoid(gates[:, 1 * hp:2 * hp])
        g_g = jnp.tanh(gates[:, 2 * hp:3 * hp])
        o_g = jax.nn.sigmoid(gates[:, 3 * hp:4 * hp])
        c_new = f_g * c + i_g * g_g
        h_new = o_g * jnp.tanh(c_new)
        hid_ref[s] = h_new
        cell_ref[s] = c_new
        return h_new, c_new

    h_fin, c_fin = jax.lax.fori_loop(0, t_blk, step, (h_sc[...], c_sc[...]),
                                     unroll=True)
    h_sc[...] = h_fin
    c_sc[...] = c_fin


def _run_rolling_layer(pre_gates, whh_t, hp, t_blk, b_blk):
    """pre_gates: (Tp, Bp, 4*hp) bf16 -> (hid, cell) each (Tp, Bp, hp) f32."""
    tp, bp, g = pre_gates.shape
    kernel = functools.partial(_lstm_recurrent_kernel, hp=hp, t_blk=t_blk)
    # TODO(synk): emitting hid/cell in bf16 would halve the writeback; kept f32
    # because they are the module's returned states (and unrolling init).
    hid, cell = pl.pallas_call(
        kernel,
        out_shape=(jax.ShapeDtypeStruct((tp, bp, hp), jnp.float32),
                   jax.ShapeDtypeStruct((tp, bp, hp), jnp.float32)),
        grid_spec=pltpu.PrefetchScalarGridSpec(
            num_scalar_prefetch=0,
            grid=(bp // b_blk, tp // t_blk),
            in_specs=[
                pl.BlockSpec((t_blk, b_blk, g), lambda b, t: (t, b, 0)),
                pl.BlockSpec((hp, g), lambda b, t: (0, 0),
                             pipeline_mode=pl.Buffered(1)),
            ],
            out_specs=[
                pl.BlockSpec((t_blk, b_blk, hp), lambda b, t: (t, b, 0)),
                pl.BlockSpec((t_blk, b_blk, hp), lambda b, t: (t, b, 0)),
            ],
            scratch_shapes=[
                pltpu.VMEM((b_blk, hp), jnp.float32),   # h carry
                pltpu.VMEM((b_blk, hp), jnp.float32),   # c carry
            ],
        ),
        compiler_params=_compiler_params(("parallel", "arbitrary")),
    )(pre_gates, whh_t)
    return hid, cell


# ----------------------------------------------------------------------------
# Pallas kernel 3: RULSTM "unrolling" branch, restructured.
# All T independent chains (chain t runs T-t+1 steps from (h_t, c_t) with a
# constant pre-gate) are stacked along the matmul M axis.  Each grid block
# handles t_chunk chains (m_blk = t_chunk*Bp rows), runs only as many steps as
# its longest chain (derived from program_id) and freezes finished rows with a
# per-row mask.  Every sequential step is one wide (m_blk, hp)@(hp, 4hp) matmul.
# ----------------------------------------------------------------------------
def _lstm_unroll_kernel(lim_ref, pre_ref, h0_ref, c0_ref, whh_ref, out_ref,
                        *, hp, t_total, t_chunk):
    n_steps = t_total + 1 - pl.program_id(0) * t_chunk   # longest chain in block
    lim = lim_ref[...]                                   # (m_blk, 1) per-row steps
    g_x = pre_ref[...].astype(jnp.float32)               # constant across steps
    w = whh_ref[...]

    def step(s, carry):
        h, c = carry
        gates = g_x + jnp.dot(h.astype(jnp.bfloat16), w,
                              preferred_element_type=jnp.float32)
        i_g = jax.nn.sigmoid(gates[:, 0 * hp:1 * hp])
        f_g = jax.nn.sigmoid(gates[:, 1 * hp:2 * hp])
        g_g = jnp.tanh(gates[:, 2 * hp:3 * hp])
        o_g = jax.nn.sigmoid(gates[:, 3 * hp:4 * hp])
        c_new = f_g * c + i_g * g_g
        h_new = o_g * jnp.tanh(c_new)
        active = s < lim                                  # (m_blk, 1) bool
        h = jnp.where(active, h_new, h)
        c = jnp.where(active, c_new, c)
        return h, c

    h_fin, _ = jax.lax.fori_loop(0, n_steps, step, (h0_ref[...], c0_ref[...]))
    out_ref[...] = h_fin


def _run_unrolling(pre_x, h0, c0, whh_t, hp, seq_len):
    """pre_x: (T, Bp, 4*hp) bf16; h0/c0: (T, Bp, hp) f32 -> preds (T, Bp, hp) f32."""
    t_tot, bp, g = pre_x.shape
    # Stack ~256 rows per block so each sequential step is a full-width matmul.
    t_chunk = max(1, min(t_tot, 256 // bp))
    tp = _round_up(t_tot, t_chunk)
    m_tot = tp * bp
    m_blk = t_chunk * bp

    def flat(a):
        if tp != t_tot:
            a = jnp.zeros((tp,) + a.shape[1:], a.dtype).at[:t_tot].set(a)
        return a.reshape(m_tot, a.shape[-1])

    pre_f = flat(pre_x)
    h0_f = flat(h0)
    c0_f = flat(c0)
    # Per-row step budget: chain t runs T - t + 1 steps (0 for padded chains).
    lim = jnp.where(jnp.arange(tp) < t_tot, seq_len - jnp.arange(tp) + 1, 0)
    lim = jnp.repeat(lim.astype(jnp.int32), bp).reshape(m_tot, 1)

    kernel = functools.partial(_lstm_unroll_kernel, hp=hp,
                               t_total=seq_len, t_chunk=t_chunk)
    out = pl.pallas_call(
        kernel,
        out_shape=jax.ShapeDtypeStruct((m_tot, hp), jnp.float32),
        grid_spec=pltpu.PrefetchScalarGridSpec(
            num_scalar_prefetch=0,
            grid=(m_tot // m_blk,),
            in_specs=[
                pl.BlockSpec((m_blk, 1), lambda i: (i, 0)),
                pl.BlockSpec((m_blk, g), lambda i: (i, 0)),
                pl.BlockSpec((m_blk, hp), lambda i: (i, 0)),
                pl.BlockSpec((m_blk, hp), lambda i: (i, 0)),
                pl.BlockSpec((hp, g), lambda i: (0, 0),
                             pipeline_mode=pl.Buffered(1)),
            ],
            out_specs=pl.BlockSpec((m_blk, hp), lambda i: (i, 0)),
        ),
        compiler_params=_compiler_params(("parallel",)),
    )(lim, pre_f, h0_f, c0_f, whh_t)
    return out.reshape(tp, bp, hp)[:t_tot]


# ----------------------------------------------------------------------------
# Modules
# ----------------------------------------------------------------------------
class OpenLSTMPallas:
    """Pallas equivalent of OpenLSTM: returns all intermediate hidden/cell."""

    def __init__(self, feat_in, feat_out, num_layers=1, dropout=0.0, seed=0):
        # TODO(synk): inter-layer dropout (num_layers>1, dropout>0, train) not applied.
        self.feat_in = feat_in
        self.feat_out = feat_out
        self.num_layers = num_layers
        self.hp = _round_up(feat_out, _LANE)
        self.fp = _round_up(feat_in, _LANE)
        key = jax.random.PRNGKey(seed)
        bound = 1.0 / float(feat_out) ** 0.5
        self.params = []    # PyTorch layout, f32 (used by references)
        self.padded = []    # kernel layout (bf16 weights, padded)
        for layer in range(num_layers):
            d_in = feat_in if layer == 0 else feat_out
            d_in_pad = self.fp if layer == 0 else self.hp
            key, k1, k2, k3, k4 = jax.random.split(key, 5)
            w_ih = jax.random.uniform(k1, (4 * feat_out, d_in), jnp.float32, -bound, bound)
            w_hh = jax.random.uniform(k2, (4 * feat_out, feat_out), jnp.float32, -bound, bound)
            b_ih = jax.random.uniform(k3, (4 * feat_out,), jnp.float32, -bound, bound)
            b_hh = jax.random.uniform(k4, (4 * feat_out,), jnp.float32, -bound, bound)
            self.params.append((w_ih, w_hh, b_ih, b_hh))
            self.padded.append(_pad_lstm_params(w_ih, w_hh, b_ih, b_hh, self.hp, d_in_pad))

    def forward_padded(self, seq):
        """seq: (T, B, feat_in) -> (hid, cell), each (T, L, Bp, hp) f32 (padded)."""
        t_len, b_len, _ = seq.shape
        hp = self.hp
        t_blk = min(t_len, _T_BLK_MAX)
        tp = _round_up(t_len, t_blk)
        b8 = _round_up(b_len, _SUBLANE)
        b_blk = min(b8, 128)
        if b_blk == b8 and b8 > 8:
            # >=2 batch blocks: megacore work on v7x, half the per-block VMEM.
            b_blk = _round_up(b8 // 2, _SUBLANE)
        bp = _round_up(b8, b_blk)
        layer_in = jnp.zeros((tp, bp, self.fp), jnp.float32)
        layer_in = layer_in.at[:t_len, :b_len, :self.feat_in].set(seq)
        hids, cells = [], []
        for (wih_t, whh_t, bias) in self.padded:
            d_l = layer_in.shape[-1]
            # Hoisted input projection: one big (Tp*Bp, D) x (D, 4hp) bf16 matmul.
            pre = _linear(layer_in.reshape(tp * bp, d_l).astype(jnp.bfloat16),
                          wih_t, bias, out_dtype=jnp.bfloat16)
            pre = pre.reshape(tp, bp, 4 * hp)
            hid, cell = _run_rolling_layer(pre, whh_t, hp, t_blk, b_blk)
            hids.append(hid)
            cells.append(cell)
            layer_in = hid
        return jnp.stack(hids, 1)[:t_len], jnp.stack(cells, 1)[:t_len]

    def __call__(self, seq):
        """seq: (T, B, feat_in) -> (hid, cell), each (T, L, B, feat_out)."""
        t_len, b_len, _ = seq.shape
        hid, cell = self.forward_padded(jnp.asarray(seq, jnp.float32))
        return (hid[:, :, :b_len, :self.feat_out],
                cell[:, :, :b_len, :self.feat_out])


class RULSTMPallas:
    """Pallas equivalent of RULSTM.forward (eval mode)."""

    def __init__(self, num_class, feat_in, hidden, dropout=0.8, depth=1,
                 sequence_completion=False, return_context=False, seed=0):
        # TODO(synk): dropout layers are identity (inference-mode forward only).
        self.num_class = num_class
        self.feat_in = feat_in
        self.hidden = hidden
        self.depth = depth
        self.sequence_completion = sequence_completion
        self.return_context = return_context
        self.hp = _round_up(hidden, _LANE)
        self.fp = _round_up(feat_in, _LANE)
        self.ncls_pad = _round_up(num_class, _LANE)

        self.rolling = OpenLSTMPallas(feat_in, hidden, num_layers=depth, seed=seed)

        key = jax.random.PRNGKey(seed + 1)
        bound = 1.0 / float(hidden) ** 0.5
        self.unroll_params = []
        self.unroll_padded = []
        for layer in range(depth):
            d_in = feat_in if layer == 0 else hidden
            d_in_pad = self.fp if layer == 0 else self.hp
            key, k1, k2, k3, k4 = jax.random.split(key, 5)
            w_ih = jax.random.uniform(k1, (4 * hidden, d_in), jnp.float32, -bound, bound)
            w_hh = jax.random.uniform(k2, (4 * hidden, hidden), jnp.float32, -bound, bound)
            b_ih = jax.random.uniform(k3, (4 * hidden,), jnp.float32, -bound, bound)
            b_hh = jax.random.uniform(k4, (4 * hidden,), jnp.float32, -bound, bound)
            self.unroll_params.append((w_ih, w_hh, b_ih, b_hh))
            self.unroll_padded.append(_pad_lstm_params(w_ih, w_hh, b_ih, b_hh,
                                                       self.hp, d_in_pad))

        key, kc1, kc2 = jax.random.split(key, 3)
        self.w_c = jax.random.uniform(kc1, (num_class, hidden), jnp.float32, -bound, bound)
        self.b_c = jax.random.uniform(kc2, (num_class,), jnp.float32, -bound, bound)
        # Classifier padded to (hp, ncls_pad) so K and N are 128-multiples
        # (unmasked lane-dense stores); logits are sliced back afterwards.
        wc_pad = jnp.zeros((self.hp, self.ncls_pad), jnp.float32)
        wc_pad = wc_pad.at[:hidden, :num_class].set(self.w_c.T)
        self.wc_t = wc_pad.astype(jnp.bfloat16)
        self.bc_pad = jnp.zeros((self.ncls_pad,), jnp.float32).at[:num_class].set(self.b_c)

    def __call__(self, inputs):
        """inputs: (B, T, feat_in) -> (B, T, num_class)."""
        b_len, t_len, _ = inputs.shape
        seq = jnp.transpose(jnp.asarray(inputs, jnp.float32), (1, 0, 2))   # (T, B, F)

        hid_pad, cell_pad = self.rolling.forward_padded(seq)               # (T, L, Bp, hp)
        bp = hid_pad.shape[2]
        hp = self.hp

        if self.sequence_completion:
            raise NotImplementedError(
                "TODO(synk): sequence_completion pre-training branch not implemented")
        if self.depth != 1:
            raise NotImplementedError(
                "TODO(synk): unrolling LSTM with depth>1 not implemented")

        wih_t, whh_t, bias = self.unroll_padded[0]
        seq_pad = jnp.zeros((t_len, bp, self.fp), jnp.float32)
        seq_pad = seq_pad.at[:, :b_len, :self.feat_in].set(seq)
        pre_x = _linear(seq_pad.reshape(t_len * bp, self.fp).astype(jnp.bfloat16),
                        wih_t, bias, out_dtype=jnp.bfloat16)
        pre_x = pre_x.reshape(t_len, bp, 4 * hp)
        preds = _run_unrolling(pre_x, hid_pad[:, 0], cell_pad[:, 0], whh_t, hp, t_len)

        # Classifier on the padded lane-dense slab; slice batch/class afterwards.
        x_cls = jnp.transpose(preds, (1, 0, 2)).reshape(bp * t_len, hp)    # (Bp*T, hp)
        y = _linear(x_cls.astype(jnp.bfloat16), self.wc_t, self.bc_pad,
                    out_dtype=jnp.float32)
        y = y.reshape(bp, t_len, self.ncls_pad)[:b_len, :, :self.num_class]
        if self.return_context:
            x_pred = jnp.transpose(preds[:, :b_len, :self.hidden], (1, 0, 2))
            c = jnp.transpose(cell_pad[:, 0, :b_len, :self.hidden], (1, 0, 2))
            return y, jnp.concatenate([x_pred, c], axis=2)
        return y


# ----------------------------------------------------------------------------
# Pure-JAX references.
#   mm=_mm_bf16, round_pre=True  : mirrors the kernels' bf16/f32 math exactly.
#   mm=_mm_f32,  round_pre=False : pure-f32 PyTorch-equivalent math.
# ----------------------------------------------------------------------------
def _mm_bf16(a, w):
    return jnp.dot(a.astype(jnp.bfloat16), w.astype(jnp.bfloat16),
                   preferred_element_type=jnp.float32)


def _mm_f32(a, w):
    return jnp.dot(a.astype(jnp.float32), w.astype(jnp.float32),
                   preferred_element_type=jnp.float32)


def _ref_pre(x, w_ih, b, mm, round_pre):
    pre = mm(x, w_ih.T) + b
    if round_pre:
        pre = pre.astype(jnp.bfloat16).astype(jnp.float32)
    return pre


def _ref_cell_from_pre(pre, h, c, w_hh, mm):
    hdim = h.shape[-1]
    gates = pre + mm(h, w_hh.T)
    i_g = jax.nn.sigmoid(gates[:, 0 * hdim:1 * hdim])
    f_g = jax.nn.sigmoid(gates[:, 1 * hdim:2 * hdim])
    g_g = jnp.tanh(gates[:, 2 * hdim:3 * hdim])
    o_g = jax.nn.sigmoid(gates[:, 3 * hdim:4 * hdim])
    c_new = f_g * c + i_g * g_g
    h_new = o_g * jnp.tanh(c_new)
    return h_new, c_new


def _reference_open_lstm(seq, params, mm, round_pre):
    layer_in = seq
    hids, cells = [], []
    for (w_ih, w_hh, b_ih, b_hh) in params:
        hdim = w_hh.shape[1]
        b_len = layer_in.shape[1]
        b = (b_ih + b_hh)[None, :]
        h = jnp.zeros((b_len, hdim), jnp.float32)
        c = jnp.zeros((b_len, hdim), jnp.float32)
        hs, cs = [], []
        for t in range(layer_in.shape[0]):
            pre = _ref_pre(layer_in[t], w_ih, b, mm, round_pre)
            h, c = _ref_cell_from_pre(pre, h, c, w_hh, mm)
            hs.append(h)
            cs.append(c)
        hids.append(jnp.stack(hs, 0))
        cells.append(jnp.stack(cs, 0))
        layer_in = hids[-1]
    return jnp.stack(hids, 1), jnp.stack(cells, 1)


def _reference_rulstm(inputs, model, mm, round_pre):
    seq = jnp.transpose(jnp.asarray(inputs, jnp.float32), (1, 0, 2))
    t_tot, b_len, _ = seq.shape
    hid, cell = _reference_open_lstm(seq, model.rolling.params, mm, round_pre)
    w_ih, w_hh, b_ih, b_hh = model.unroll_params[0]
    b = (b_ih + b_hh)[None, :]
    preds = []
    for t in range(t_tot):
        h, c = hid[t, 0], cell[t, 0]
        pre_t = _ref_pre(seq[t], w_ih, b, mm, round_pre)
        for _ in range(t_tot - t + 1):
            h, c = _ref_cell_from_pre(pre_t, h, c, w_hh, mm)
        preds.append(h)
    x_pred = jnp.stack(preds, 1)                                      # (B, T, H)
    y = mm(x_pred.reshape(-1, model.hidden), model.w_c.T) + model.b_c
    return y.reshape(b_len, t_tot, model.num_class), hid, cell


if __name__ == "__main__":
    B, T, FEAT_IN, HIDDEN, NUM_CLASS = 4, 8, 16, 32, 10

    key = jax.random.PRNGKey(0)
    inputs = jax.random.normal(key, (B, T, FEAT_IN), dtype=jnp.float32)

    model = RULSTMPallas(NUM_CLASS, FEAT_IN, HIDDEN, dropout=0.8, depth=1, seed=0)

    seq = jnp.transpose(inputs, (1, 0, 2))
    hid_k, cell_k = jax.jit(lambda s: model.rolling(s))(seq)   # (T, 1, B, H)
    y = jax.jit(lambda x: model(x))(inputs)                    # (B, T, num_class)
    jax.block_until_ready((y, hid_k, cell_k))

    assert hid_k.shape == (T, 1, B, HIDDEN), hid_k.shape
    assert cell_k.shape == (T, 1, B, HIDDEN), cell_k.shape
    assert y.shape == (B, T, NUM_CLASS), y.shape

    # Tight check vs a pure-JAX reference mirroring the kernels' bf16/f32 math.
    y_ref, hid_ref, cell_ref = _reference_rulstm(inputs, model, _mm_bf16, True)
    assert jnp.allclose(hid_k, hid_ref, atol=5e-3, rtol=5e-3)
    assert jnp.allclose(cell_k, cell_ref, atol=5e-3, rtol=5e-3)
    assert jnp.allclose(y, y_ref, atol=5e-3, rtol=5e-3)

    # Loose check vs the full-f32 reference (bounds the intentional bf16 cast).
    y_f32, _, _ = _reference_rulstm(inputs, model, _mm_f32, False)
    assert jnp.allclose(y, y_f32, atol=0.35), float(jnp.max(jnp.abs(y - y_f32)))

    print("KERNEL_OK")
</pallas_src>

<mosaic_0001>
module attributes {stable_mosaic.version = 11 : i64} {
  func.func @_linear_kernel(%arg0: i32, %arg1: memref<64x128xbf16, #tpu.memory_space<vmem>>, %arg2: memref<128x512xbf16, #tpu.memory_space<vmem>>, %arg3: memref<1x512xf32, #tpu.memory_space<vmem>>, %arg4: memref<64x512xbf16, #tpu.memory_space<vmem>>) attributes {dimension_semantics = [#tpu.dimension_semantics<parallel>], iteration_bounds = array<i64: 1>, scalar_prefetch = 0 : i64, scratch_operands = 0 : i64, tpu.core_type = #tpu.core_type<tc>, window_params = [{transform_indices = @transform_0, window_bounds = array<i64: 64, 128>}, {pipeline_mode = #tpu.pipeline_mode<synchronous>, transform_indices = @transform_1, window_bounds = array<i64: 128, 512>}, {pipeline_mode = #tpu.pipeline_mode<synchronous>, transform_indices = @transform_2, window_bounds = array<i64: 1, 512>}, {transform_indices = @transform_3, window_bounds = array<i64: 64, 512>}]} {
    %c0 = arith.constant 0 : index
    %c0_0 = arith.constant 0 : index
    %0 = vector.load %arg1[%c0, %c0_0] : memref<64x128xbf16, #tpu.memory_space<vmem>>, vector<64x128xbf16>
    %c0_1 = arith.constant 0 : index
    %c0_2 = arith.constant 0 : index
    %1 = vector.load %arg2[%c0_1, %c0_2] : memref<128x512xbf16, #tpu.memory_space<vmem>>, vector<128x512xbf16>
    %cst = arith.constant dense<0.000000e+00> : vector<64x512xf32>
    %2 = tpu.matmul %0, %1, %cst {dimension_numbers = #tpu.dot_dimension_numbers<[1], [0], [0], [1], [0, 0, 1, 1], [], []>} : vector<64x128xbf16>, vector<128x512xbf16>, vector<64x512xf32> -> vector<64x512xf32>
    %c0_3 = arith.constant 0 : index
    %c0_4 = arith.constant 0 : index
    %3 = vector.load %arg3[%c0_3, %c0_4] : memref<1x512xf32, #tpu.memory_space<vmem>>, vector<1x512xf32>
    %4 = vector.broadcast %3 : vector<1x512xf32> to vector<64x512xf32>
    %5 = arith.addf %2, %4 : vector<64x512xf32>
    %6 = arith.truncf %5 : vector<64x512xf32> to vector<64x512xbf16>
    %c0_5 = arith.constant 0 : index
    %c0_6 = arith.constant 0 : index
    %7 = vector.load %arg4[%c0_5, %c0_6] : memref<64x512xbf16, #tpu.memory_space<vmem>>, vector<64x512xbf16>
    tpu.vector_store %arg4[%c0_5, %c0_6], %6 {strides = array<i32>} : memref<64x512xbf16, #tpu.memory_space<vmem>>, vector<64x512xbf16>,
    return
  }
  func.func @transform_0(%arg0: i32) -> (i32, i32) {
    %c0_i32 = arith.constant 0 : i32
    %c0_i32_0 = arith.constant 0 : i32
    return %arg0, %c0_i32 : i32, i32
  }
  func.func @transform_1(%arg0: i32) -> (i32, i32) {
    %c0_i32 = arith.constant 0 : i32
    %c0_i32_0 = arith.constant 0 : i32
    %c0_i32_1 = arith.constant 0 : i32
    return %c0_i32, %c0_i32_0 : i32, i32
  }
  func.func @transform_2(%arg0: i32) -> (i32, i32) {
    %c0_i32 = arith.constant 0 : i32
    %c0_i32_0 = arith.constant 0 : i32
    %c0_i32_1 = arith.constant 0 : i32
    return %c0_i32, %c0_i32_0 : i32, i32
  }
  func.func @transform_3(%arg0: i32) -> (i32, i32) {
    %c0_i32 = arith.constant 0 : i32
    %c0_i32_0 = arith.constant 0 : i32
    return %arg0, %c0_i32 : i32, i32
  }
}

module attributes {stable_mosaic.version = 11 : i64} {
  func.func @_lstm_recurrent_kernel(%arg0: i32, %arg1: i32, %arg2: memref<8x8x512xbf16, #tpu.memory_space<vmem>>, %arg3: memref<128x512xbf16, #tpu.memory_space<vmem>>, %arg4: memref<8x8x128xf32, #tpu.memory_space<vmem>>, %arg5: memref<8x8x128xf32, #tpu.memory_space<vmem>>, %arg6: memref<8x128xf32, #tpu.memory_space<vmem>>, %arg7: memref<8x128xf32, #tpu.memory_space<vmem>>) attributes {dimension_semantics = [#tpu.dimension_semantics<parallel>, #tpu.dimension_semantics<arbitrary>], iteration_bounds = array<i64: 1, 1>, scalar_prefetch = 0 : i64, scratch_operands = 2 : i64, tpu.core_type = #tpu.core_type<tc>, window_params = [{transform_indices = @transform_0, window_bounds = array<i64: 8, 8, 512>}, {pipeline_mode = #tpu.pipeline_mode<synchronous>, transform_indices = @transform_1, window_bounds = array<i64: 128, 512>}, {transform_indices = @transform_2, window_bounds = array<i64: 8, 8, 128>}, {transform_indices = @transform_3, window_bounds = array<i64: 8, 8, 128>}]} {
    %c0_i32 = arith.constant 0 : i32
    %0 = arith.cmpi eq, %arg1, %c0_i32 : i32
    %1 = arith.extui %0 : i1 to i32
    %c0_i32_0 = arith.constant 0 : i32
    %2 = arith.cmpi ne, %1, %c0_i32_0 : i32
    scf.if %2 {
      %cst_90 = arith.constant 0.000000e+00 : f32
      %328 = vector.broadcast %cst_90 : f32 to vector<8x128xf32>
      %c0_91 = arith.constant 0 : index
      %c0_92 = arith.constant 0 : index
      %329 = vector.load %arg6[%c0_91, %c0_92] : memref<8x128xf32, #tpu.memory_space<vmem>>, vector<8x128xf32>
      tpu.vector_store %arg6[%c0_91, %c0_92], %328 {strides = array<i32>} : memref<8x128xf32, #tpu.memory_space<vmem>>, vector<8x128xf32>,
      %cst_93 = arith.constant 0.000000e+00 : f32
      %330 = vector.broadcast %cst_93 : f32 to vector<8x128xf32>
      %c0_94 = arith.constant 0 : index
      %c0_95 = arith.constant 0 : index
      %331 = vector.load %arg7[%c0_94, %c0_95] : memref<8x128xf32, #tpu.memory_space<vmem>>, vector<8x128xf32>
      tpu.vector_store %arg7[%c0_94, %c0_95], %330 {strides = array<i32>} : memref<8x128xf32, #tpu.memory_space<vmem>>, vector<8x128xf32>,
    } else {
    }
    %c0 = arith.constant 0 : index
    %c0_1 = arith.constant 0 : index
    %3 = vector.load %arg3[%c0, %c0_1] : memref<128x512xbf16, #tpu.memory_space<vmem>>, vector<128x512xbf16>
    %c0_2 = arith.constant 0 : index
    %c0_3 = arith.constant 0 : index
    %4 = vector.load %arg6[%c0_2, %c0_3] : memref<8x128xf32, #tpu.memory_space<vmem>>, vector<8x128xf32>
    %c0_4 = arith.constant 0 : index
    %c0_5 = arith.constant 0 : index
    %5 = vector.load %arg7[%c0_4, %c0_5] : memref<8x128xf32, #tpu.memory_space<vmem>>, vector<8x128xf32>
    %c0_i32_6 = arith.constant 0 : i32
    %6 = arith.index_cast %c0_i32_6 : i32 to index
    %c0_7 = arith.constant 0 : index
    %c0_8 = arith.constant 0 : index
    %7 = vector.load %arg2[%6, %c0_7, %c0_8] : memref<8x8x512xbf16, #tpu.memory_space<vmem>>, vector<1x8x512xbf16>
    %8 = vector.shape_cast %7 : vector<1x8x512xbf16> to vector<8x512xbf16>
    %9 = arith.extf %8 : vector<8x512xbf16> to vector<8x512xf32>
    %10 = arith.truncf %4 : vector<8x128xf32> to vector<8x128xbf16>
    %cst = arith.constant dense<0.000000e+00> : vector<8x512xf32>
    %11 = tpu.matmul %10, %3, %cst {dimension_numbers = #tpu.dot_dimension_numbers<[1], [0], [0], [1], [0, 0, 1, 1], [], []>} : vector<8x128xbf16>, vector<128x512xbf16>, vector<8x512xf32> -> vector<8x512xf32>
    %12 = arith.addf %9, %11 : vector<8x512xf32>
    %13 = vector.extract_strided_slice %12 {offsets = [0, 0], sizes = [8, 128], strides = [1, 1]} : vector<8x512xf32> to vector<8x128xf32>
    %14 = arith.negf %13 : vector<8x128xf32>
    %15 = math.exp %14 : vector<8x128xf32>
    %cst_9 = arith.constant 1.000000e+00 : f32
    %16 = vector.broadcast %cst_9 : f32 to vector<8x128xf32>
    %17 = arith.addf %16, %15 : vector<8x128xf32>
    %18 = arith.divf %16, %17 : vector<8x128xf32>
    %19 = vector.extract_strided_slice %12 {offsets = [0, 128], sizes = [8, 128], strides = [1, 1]} : vector<8x512xf32> to vector<8x128xf32>
    %20 = arith.negf %19 : vector<8x128xf32>
    %21 = math.exp %20 : vector<8x128xf32>
    %cst_10 = arith.constant 1.000000e+00 : f32
    %22 = vector.broadcast %cst_10 : f32 to vector<8x128xf32>
    %23 = arith.addf %22, %21 : vector<8x128xf32>
    %24 = arith.divf %22, %23 : vector<8x128xf32>
    %25 = vector.extract_strided_slice %12 {offsets = [0, 256], sizes = [8, 128], strides = [1, 1]} : vector<8x512xf32> to vector<8x128xf32>
    %26 = math.tanh %25 : vector<8x128xf32>
    %27 = vector.extract_strided_slice %12 {offsets = [0, 384], sizes = [8, 128], strides = [1, 1]} : vector<8x512xf32> to vector<8x128xf32>
    %28 = arith.negf %27 : vector<8x128xf32>
    %29 = math.exp %28 : vector<8x128xf32>
    %cst_11 = arith.constant 1.000000e+00 : f32
    %30 = vector.broadcast %cst_11 : f32 to vector<8x128xf32>
    %31 = arith.addf %30, %29 : vector<8x128xf32>
    %32 = arith.divf %30, %31 : vector<8x128xf32>
    %33 = arith.mulf %24, %5 : vector<8x128xf32>
    %34 = arith.mulf %18, %26 : vector<8x128xf32>
    %35 = arith.addf %33, %34 : vector<8x128xf32>
    %36 = math.tanh %35 : vector<8x128xf32>
    %37 = arith.mulf %32, %36 : vector<8x128xf32>
    %38 = arith.index_cast %c0_i32_6 : i32 to index
    %c0_12 = arith.constant 0 : index
    %c0_13 = arith.constant 0 : index
    %39 = vector.load %arg4[%38, %c0_12, %c0_13] : memref<8x8x128xf32, #tpu.memory_space<vmem>>, vector<1x8x128xf32>
    %40 = vector.shape_cast %39 : vector<1x8x128xf32> to vector<8x128xf32>
    %41 = vector.shape_cast %37 : vector<8x128xf32> to vector<1x8x128xf32>
    tpu.vector_store %arg4[%38, %c0_12, %c0_13], %41 {strides = array<i32>} : memref<8x8x128xf32, #tpu.memory_space<vmem>>, vector<1x8x128xf32>,
    %42 = arith.index_cast %c0_i32_6 : i32 to index
    %c0_14 = arith.constant 0 : index
    %c0_15 = arith.constant 0 : index
    %43 = vector.load %arg5[%42, %c0_14, %c0_15] : memref<8x8x128xf32, #tpu.memory_space<vmem>>, vector<1x8x128xf32>
    %44 = vector.shape_cast %43 : vector<1x8x128xf32> to vector<8x128xf32>
    %45 = vector.shape_cast %35 : vector<8x128xf32> to vector<1x8x128xf32>
    tpu.vector_store %arg5[%42, %c0_14, %c0_15], %45 {strides = array<i32>} : memref<8x8x128xf32, #tpu.memory_space<vmem>>, vector<1x8x128xf32>,
    %c1_i32 = arith.constant 1 : i32
    %46 = arith.index_cast %c1_i32 : i32 to index
    %c0_16 = arith.constant 0 : index
    %c0_17 = arith.constant 0 : index
    %47 = vector.load %arg2[%46, %c0_16, %c0_17] : memref<8x8x512xbf16, #tpu.memory_space<vmem>>, vector<1x8x512xbf16>
    %48 = vector.shape_cast %47 : vector<1x8x512xbf16> to vector<8x512xbf16>
    %49 = arith.extf %48 : vector<8x512xbf16> to vector<8x512xf32>
    %50 = arith.truncf %37 : vector<8x128xf32> to vector<8x128xbf16>
    %cst_18 = arith.constant dense<0.000000e+00> : vector<8x512xf32>
    %51 = tpu.matmul %50, %3, %cst_18 {dimension_numbers = #tpu.dot_dimension_numbers<[1], [0], [0], [1], [0, 0, 1, 1], [], []>} : vector<8x128xbf16>, vector<128x512xbf16>, vector<8x512xf32> -> vector<8x512xf32>
    %52 = arith.addf %49, %51 : vector<8x512xf32>
    %53 = vector.extract_strided_slice %52 {offsets = [0, 0], sizes = [8, 128], strides = [1, 1]} : vector<8x512xf32> to vector<8x128xf32>
    %54 = arith.negf %53 : vector<8x128xf32>
    %55 = math.exp %54 : vector<8x128xf32>
    %cst_19 = arith.constant 1.000000e+00 : f32
    %56 = vector.broadcast %cst_19 : f32 to vector<8x128xf32>
    %57 = arith.addf %56, %55 : vector<8x128xf32>
    %58 = arith.divf %56, %57 : vector<8x128xf32>
    %59 = vector.extract_strided_slice %52 {offsets = [0, 128], sizes = [8, 128], strides = [1, 1]} : vector<8x512xf32> to vector<8x128xf32>
    %60 = arith.negf %59 : vector<8x128xf32>
    %61 = math.exp %60 : vector<8x128xf32>
    %cst_20 = arith.constant 1.000000e+00 : f32
    %62 = vector.broadcast %cst_20 : f32 to vector<8x128xf32>
    %63 = arith.addf %62, %61 : vector<8x128xf32>
    %64 = arith.divf %62, %63 : vector<8x128xf32>
    %65 = vector.extract_strided_slice %52 {offsets = [0, 256], sizes = [8, 128], strides = [1, 1]} : vector<8x512xf32> to vector<8x128xf32>
    %66 = math.tanh %65 : vector<8x128xf32>
    %67 = vector.extract_strided_slice %52 {offsets = [0, 384], sizes = [8, 128], strides = [1, 1]} : vector<8x512xf32> to vector<8x128xf32>
    %68 = arith.negf %67 : vector<8x128xf32>
    %69 = math.exp %68 : vector<8x128xf32>
    %cst_21 = arith.constant 1.000000e+00 : f32
    %70 = vector.broadcast %cst_21 : f32 to vector<8x128xf32>
    %71 = arith.addf %70, %69 : vector<8x128xf32>
    %72 = arith.divf %70, %71 : vector<8x128xf32>
    %73 = arith.mulf %64, %35 : vector<8x128xf32>
    %74 = arith.mulf %58, %66 : vector<8x128xf32>
    %75 = arith.addf %73, %74 : vector<8x128xf32>
    %76 = math.tanh %75 : vector<8x128xf32>
    %77 = arith.mulf %72, %76 : vector<8x128xf32>
    %78 = arith.index_cast %c1_i32 : i32 to index
    %c0_22 = arith.constant 0 : index
    %c0_23 = arith.constant 0 : index
    %79 = vector.load %arg4[%78, %c0_22, %c0_23] : memref<8x8x128xf32, #tpu.memory_space<vmem>>, vector<1x8x128xf32>
    %80 = vector.shape_cast %79 : vector<1x8x128xf32> to vector<8x128xf32>
    %81 = vector.shape_cast %77 : vector<8x128xf32> to vector<1x8x128xf32>
    tpu.vector_store %arg4[%78, %c0_22, %c0_23], %81 {strides = array<i32>} : memref<8x8x128xf32, #tpu.memory_space<vmem>>, vector<1x8x128xf32>,
    %82 = arith.index_cast %c1_i32 : i32 to index
    %c0_24 = arith.constant 0 : index
    %c0_25 = arith.constant 0 : index
    %83 = vector.load %arg5[%82, %c0_24, %c0_25] : memref<8x8x128xf32, #tpu.memory_space<vmem>>, vector<1x8x128xf32>
    %84 = vector.shape_cast %83 : vector<1x8x128xf32> to vector<8x128xf32>
    %85 = vector.shape_cast %75 : vector<8x128xf32> to vector<1x8x128xf32>
    tpu.vector_store %arg5[%82, %c0_24, %c0_25], %85 {strides = array<i32>} : memref<8x8x128xf32, #tpu.memory_space<vmem>>, vector<1x8x128xf32>,
    %c2_i32 = arith.constant 2 : i32
    %86 = arith.index_cast %c2_i32 : i32 to index
    %c0_26 = arith.constant 0 : index
    %c0_27 = arith.constant 0 : index
    %87 = vector.load %arg2[%86, %c0_26, %c0_27] : memref<8x8x512xbf16, #tpu.memory_space<vmem>>, vector<1x8x512xbf16>
    %88 = vector.shape_cast %87 : vector<1x8x512xbf16> to vector<8x512xbf16>
    %89 = arith.extf %88 : vector<8x512xbf16> to vector<8x512xf32>
    %90 = arith.truncf %77 : vector<8x128xf32> to vector<8x128xbf16>
    %cst_28 = arith.constant dense<0.000000e+00> : vector<8x512xf32>
    %91 = tpu.matmul %90, %3, %cst_28 {dimension_numbers = #tpu.dot_dimension_numbers<[1], [0], [0], [1], [0, 0, 1, 1], [], []>} : vector<8x128xbf16>, vector<128x512xbf16>, vector<8x512xf32> -> vector<8x512xf32>
    %92 = arith.addf %89, %91 : vector<8x512xf32>
    %93 = vector.extract_strided_slice %92 {offsets = [0, 0], sizes = [8, 128], strides = [1, 1]} : vector<8x512xf32> to vector<8x128xf32>
    %94 = arith.negf %93 : vector<8x128xf32>
    %95 = math.exp %94 : vector<8x128xf32>
    %cst_29 = arith.constant 1.000000e+00 : f32
    %96 = vector.broadcast %cst_29 : f32 to vector<8x128xf32>
    %97 = arith.addf %96, %95 : vector<8x128xf32>
    %98 = arith.divf %96, %97 : vector<8x128xf32>
    %99 = vector.extract_strided_slice %92 {offsets = [0, 128], sizes = [8, 128], strides = [1, 1]} : vector<8x512xf32> to vector<8x128xf32>
    %100 = arith.negf %99 : vector<8x128xf32>
    %101 = math.exp %100 : vector<8x128xf32>
    %cst_30 = arith.constant 1.000000e+00 : f32
    %102 = vector.broadcast %cst_30 : f32 to vector<8x128xf32>
    %103 = arith.addf %102, %101 : vector<8x128xf32>
    %104 = arith.divf %102, %103 : vector<8x128xf32>
    %105 = vector.extract_strided_slice %92 {offsets = [0, 256], sizes = [8, 128], strides = [1, 1]} : vector<8x512xf32> to vector<8x128xf32>
    %106 = math.tanh %105 : vector<8x128xf32>
    %107 = vector.extract_strided_slice %92 {offsets = [0, 384], sizes = [8, 128], strides = [1, 1]} : vector<8x512xf32> to vector<8x128xf32>
    %108 = arith.negf %107 : vector<8x128xf32>
    %109 = math.exp %108 : vector<8x128xf32>
    %cst_31 = arith.constant 1.000000e+00 : f32
    %110 = vector.broadcast %cst_31 : f32 to vector<8x128xf32>
    %111 = arith.addf %110, %109 : vector<8x128xf32>
    %112 = arith.divf %110, %111 : vector<8x128xf32>
    %113 = arith.mulf %104, %75 : vector<8x128xf32>
    %114 = arith.mulf %98, %106 : vector<8x128xf32>
    %115 = arith.addf %113, %114 : vector<8x128xf32>
    %116 = math.tanh %115 : vector<8x128xf32>
    %117 = arith.mulf %112, %116 : vector<8x128xf32>
    %118 = arith.index_cast %c2_i32 : i32 to index
    %c0_32 = arith.constant 0 : index
    %c0_33 = arith.constant 0 : index
    %119 = vector.load %arg4[%118, %c0_32, %c0_33] : memref<8x8x128xf32, #tpu.memory_space<vmem>>, vector<1x8x128xf32>
    %120 = vector.shape_cast %119 : vector<1x8x128xf32> to vector<8x128xf32>
    %121 = vector.shape_cast %117 : vector<8x128xf32> to vector<1x8x128xf32>
    tpu.vector_store %arg4[%118, %c0_32, %c0_33], %121 {strides = array<i32>} : memref<8x8x128xf32, #tpu.memory_space<vmem>>, vector<1x8x128xf32>,
    %122 = arith.index_cast %c2_i32 : i32 to index
    %c0_34 = arith.constant 0 : index
    %c0_35 = arith.constant 0 : index
    %123 = vector.load %arg5[%122, %c0_34, %c0_35] : memref<8x8x128xf32, #tpu.memory_space<vmem>>, vector<1x8x128xf32>
    %124 = vector.shape_cast %123 : vector<1x8x128xf32> to vector<8x128xf32>
    %125 = vector.shape_cast %115 : vector<8x128xf32> to vector<1x8x128xf32>
    tpu.vector_store %arg5[%122, %c0_34, %c0_35], %125 {strides = array<i32>} : memref<8x8x128xf32, #tpu.memory_space<vmem>>, vector<1x8x128xf32>,
    %c3_i32 = arith.constant 3 : i32
    %126 = arith.index_cast %c3_i32 : i32 to index
    %c0_36 = arith.constant 0 : index
    %c0_37 = arith.constant 0 : index
    %127 = vector.load %arg2[%126, %c0_36, %c0_37] : memref<8x8x512xbf16, #tpu.memory_space<vmem>>, vector<1x8x512xbf16>
    %128 = vector.shape_cast %127 : vector<1x8x512xbf16> to vector<8x512xbf16>
    %129 = arith.extf %128 : vector<8x512xbf16> to vector<8x512xf32>
    %130 = arith.truncf %117 : vector<8x128xf32> to vector<8x128xbf16>
    %cst_38 = arith.constant dense<0.000000e+00> : vector<8x512xf32>
    %131 = tpu.matmul %130, %3, %cst_38 {dimension_numbers = #tpu.dot_dimension_numbers<[1], [0], [0], [1], [0, 0, 1, 1], [], []>} : vector<8x128xbf16>, vector<128x512xbf16>, vector<8x512xf32> -> vector<8x512xf32>
    %132 = arith.addf %129, %131 : vector<8x512xf32>
    %133 = vector.extract_strided_slice %132 {offsets = [0, 0], sizes = [8, 128], strides = [1, 1]} : vector<8x512xf32> to vector<8x128xf32>
    %134 = arith.negf %133 : vector<8x128xf32>
    %135 = math.exp %134 : vector<8x128xf32>
    %cst_39 = arith.constant 1.000000e+00 : f32
    %136 = vector.broadcast %cst_39 : f32 to vector<8x128xf32>
    %137 = arith.addf %136, %135 : vector<8x128xf32>
    %138 = arith.divf %136, %137 : vector<8x128xf32>
    %139 = vector.extract_strided_slice %132 {offsets = [0, 128], sizes = [8, 128], strides = [1, 1]} : vector<8x512xf32> to vector<8x128xf32>
    %140 = arith.negf %139 : vector<8x128xf32>
    %141 = math.exp %140 : vector<8x128xf32>
    %cst_40 = arith.constant 1.000000e+00 : f32
    %142 = vector.broadcast %cst_40 : f32 to vector<8x128xf32>
    %143 = arith.addf %142, %141 : vector<8x128xf32>
    %144 = arith.divf %142, %143 : vector<8x128xf32>
    %145 = vector.extract_strided_slice %132 {offsets = [0, 256], sizes = [8, 128], strides = [1, 1]} : vector<8x512xf32> to vector<8x128xf32>
    %146 = math.tanh %145 : vector<8x128xf32>
    %147 = vector.extract_strided_slice %132 {offsets = [0, 384], sizes = [8, 128], strides = [1, 1]} : vector<8x512xf32> to vector<8x128xf32>
    %148 = arith.negf %147 : vector<8x128xf32>
    %149 = math.exp %148 : vector<8x128xf32>
    %cst_41 = arith.constant 1.000000e+00 : f32
    %150 = vector.broadcast %cst_41 : f32 to vector<8x128xf32>
    %151 = arith.addf %150, %149 : vector<8x128xf32>
    %152 = arith.divf %150, %151 : vector<8x128xf32>
    %153 = arith.mulf %144, %115 : vector<8x128xf32>
    %154 = arith.mulf %138, %146 : vector<8x128xf32>
    %155 = arith.addf %153, %154 : vector<8x128xf32>
    %156 = math.tanh %155 : vector<8x128xf32>
    %157 = arith.mulf %152, %156 : vector<8x128xf32>
    %158 = arith.index_cast %c3_i32 : i32 to index
    %c0_42 = arith.constant 0 : index
    %c0_43 = arith.constant 0 : index
    %159 = vector.load %arg4[%158, %c0_42, %c0_43] : memref<8x8x128xf32, #tpu.memory_space<vmem>>, vector<1x8x128xf32>
    %160 = vector.shape_cast %159 : vector<1x8x128xf32> to vector<8x128xf32>
    %161 = vector.shape_cast %157 : vector<8x128xf32> to vector<1x8x128xf32>
    tpu.vector_store %arg4[%158, %c0_42, %c0_43], %161 {strides = array<i32>} : memref<8x8x128xf32, #tpu.memory_space<vmem>>, vector<1x8x128xf32>,
    %162 = arith.index_cast %c3_i32 : i32 to index
    %c0_44 = arith.constant 0 : index
    %c0_45 = arith.constant 0 : index
    %163 = vector.load %arg5[%162, %c0_44, %c0_45] : memref<8x8x128xf32, #tpu.memory_space<vmem>>, vector<1x8x128xf32>
    %164 = vector.shape_cast %163 : vector<1x8x128xf32> to vector<8x128xf32>
    %165 = vector.shape_cast %155 : vector<8x128xf32> to vector<1x8x128xf32>
    tpu.vector_store %arg5[%162, %c0_44, %c0_45], %165 {strides = array<i32>} : memref<8x8x128xf32, #tpu.memory_space<vmem>>, vector<1x8x128xf32>,
    %c4_i32 = arith.constant 4 : i32
    %166 = arith.index_cast %c4_i32 : i32 to index
    %c0_46 = arith.constant 0 : index
    %c0_47 = arith.constant 0 : index
    %167 = vector.load %arg2[%166, %c0_46, %c0_47] : memref<8x8x512xbf16, #tpu.memory_space<vmem>>, vector<1x8x512xbf16>
    %168 = vector.shape_cast %167 : vector<1x8x512xbf16> to vector<8x512xbf16>
    %169 = arith.extf %168 : vector<8x512xbf16> to vector<8x512xf32>
    %170 = arith.truncf %157 : vector<8x128xf32> to vector<8x128xbf16>
    %cst_48 = arith.constant dense<0.000000e+00> : vector<8x512xf32>
    %171 = tpu.matmul %170, %3, %cst_48 {dimension_numbers = #tpu.dot_dimension_numbers<[1], [0], [0], [1], [0, 0, 1, 1], [], []>} : vector<8x128xbf16>, vector<128x512xbf16>, vector<8x512xf32> -> vector<8x512xf32>
    %172 = arith.addf %169, %171 : vector<8x512xf32>
    %173 = vector.extract_strided_slice %172 {offsets = [0, 0], sizes = [8, 128], strides = [1, 1]} : vector<8x512xf32> to vector<8x128xf32>
    %174 = arith.negf %173 : vector<8x128xf32>
    %175 = math.exp %174 : vector<8x128xf32>
    %cst_49 = arith.constant 1.000000e+00 : f32
    %176 = vector.broadcast %cst_49 : f32 to vector<8x128xf32>
    %177 = arith.addf %176, %175 : vector<8x128xf32>
    %178 = arith.divf %176, %177 : vector<8x128xf32>
    %179 = vector.extract_strided_slice %172 {offsets = [0, 128], sizes = [8, 128], strides = [1, 1]} : vector<8x512xf32> to vector<8x128xf32>
    %180 = arith.negf %179 : vector<8x128xf32>
    %181 = math.exp %180 : vector<8x128xf32>
    %cst_50 = arith.constant 1.000000e+00 : f32
    %182 = vector.broadcast %cst_50 : f32 to vector<8x128xf32>
    %183 = arith.addf %182, %181 : vector<8x128xf32>
    %184 = arith.divf %182, %183 : vector<8x128xf32>
    %185 = vector.extract_strided_slice %172 {offsets = [0, 256], sizes = [8, 128], strides = [1, 1]} : vector<8x512xf32> to vector<8x128xf32>
    %186 = math.tanh %185 : vector<8x128xf32>
    %187 = vector.extract_strided_slice %172 {offsets = [0, 384], sizes = [8, 128], strides = [1, 1]} : vector<8x512xf32> to vector<8x128xf32>
    %188 = arith.negf %187 : vector<8x128xf32>
    %189 = math.exp %188 : vector<8x128xf32>
    %cst_51 = arith.constant 1.000000e+00 : f32
    %190 = vector.broadcast %cst_51 : f32 to vector<8x128xf32>
    %191 = arith.addf %190, %189 : vector<8x128xf32>
    %192 = arith.divf %190, %191 : vector<8x128xf32>
    %193 = arith.mulf %184, %155 : vector<8x128xf32>
    %194 = arith.mulf %178, %186 : vector<8x128xf32>
    %195 = arith.addf %193, %194 : vector<8x128xf32>
    %196 = math.tanh %195 : vector<8x128xf32>
    %197 = arith.mulf %192, %196 : vector<8x128xf32>
    %198 = arith.index_cast %c4_i32 : i32 to index
    %c0_52 = arith.constant 0 : index
    %c0_53 = arith.constant 0 : index
    %199 = vector.load %arg4[%198, %c0_52, %c0_53] : memref<8x8x128xf32, #tpu.memory_space<vmem>>, vector<1x8x128xf32>
    %200 = vector.shape_cast %199 : vector<1x8x128xf32> to vector<8x128xf32>
    %201 = vector.shape_cast %197 : vector<8x128xf32> to vector<1x8x128xf32>
    tpu.vector_store %arg4[%198, %c0_52, %c0_53], %201 {strides = array<i32>} : memref<8x8x128xf32, #tpu.memory_space<vmem>>, vector<1x8x128xf32>,
    %202 = arith.index_cast %c4_i32 : i32 to index
    %c0_54 = arith.constant 0 : index
    %c0_55 = arith.constant 0 : index
    %203 = vector.load %arg5[%202, %c0_54, %c0_55] : memref<8x8x128xf32, #tpu.memory_space<vmem>>, vector<1x8x128xf32>
    %204 = vector.shape_cast %203 : vector<1x8x128xf32> to vector<8x128xf32>
    %205 = vector.shape_cast %195 : vector<8x128xf32> to vector<1x8x128xf32>
    tpu.vector_store %arg5[%202, %c0_54, %c0_55], %205 {strides = array<i32>} : memref<8x8x128xf32, #tpu.memory_space<vmem>>, vector<1x8x128xf32>,
    %c5_i32 = arith.constant 5 : i32
    %206 = arith.index_cast %c5_i32 : i32 to index
    %c0_56 = arith.constant 0 : index
    %c0_57 = arith.constant 0 : index
    %207 = vector.load %arg2[%206, %c0_56, %c0_57] : memref<8x8x512xbf16, #tpu.memory_space<vmem>>, vector<1x8x512xbf16>
    %208 = vector.shape_cast %207 : vector<1x8x512xbf16> to vector<8x512xbf16>
    %209 = arith.extf %208 : vector<8x512xbf16> to vector<8x512xf32>
    %210 = arith.truncf %197 : vector<8x128xf32> to vector<8x128xbf16>
    %cst_58 = arith.constant dense<0.000000e+00> : vector<8x512xf32>
    %211 = tpu.matmul %210, %3, %cst_58 {dimension_numbers = #tpu.dot_dimension_numbers<[1], [0], [0], [1], [0, 0, 1, 1], [], []>} : vector<8x128xbf16>, vector<128x512xbf16>, vector<8x512xf32> -> vector<8x512xf32>
    %212 = arith.addf %209, %211 : vector<8x512xf32>
    %213 = vector.extract_strided_slice %212 {offsets = [0, 0], sizes = [8, 128], strides = [1, 1]} : vector<8x512xf32> to vector<8x128xf32>
    %214 = arith.negf %213 : vector<8x128xf32>
    %215 = math.exp %214 : vector<8x128xf32>
    %cst_59 = arith.constant 1.000000e+00 : f32
    %216 = vector.broadcast %cst_59 : f32 to vector<8x128xf32>
    %217 = arith.addf %216, %215 : vector<8x128xf32>
    %218 = arith.divf %216, %217 : vector<8x128xf32>
    %219 = vector.extract_strided_slice %212 {offsets = [0, 128], sizes = [8, 128], strides = [1, 1]} : vector<8x512xf32> to vector<8x128xf32>
    %220 = arith.negf %219 : vector<8x128xf32>
    %221 = math.exp %220 : vector<8x128xf32>
    %cst_60 = arith.constant 1.000000e+00 : f32
    %222 = vector.broadcast %cst_60 : f32 to vector<8x128xf32>
    %223 = arith.addf %222, %221 : vector<8x128xf32>
    %224 = arith.divf %222, %223 : vector<8x128xf32>
    %225 = vector.extract_strided_slice %212 {offsets = [0, 256], sizes = [8, 128], strides = [1, 1]} : vector<8x512xf32> to vector<8x128xf32>
    %226 = math.tanh %225 : vector<8x128xf32>
    %227 = vector.extract_strided_slice %212 {offsets = [0, 384], sizes = [8, 128], strides = [1, 1]} : vector<8x512xf32> to vector<8x128xf32>
    %228 = arith.negf %227 : vector<8x128xf32>
    %229 = math.exp %228 : vector<8x128xf32>
    %cst_61 = arith.constant 1.000000e+00 : f32
    %230 = vector.broadcast %cst_61 : f32 to vector<8x128xf32>
    %231 = arith.addf %230, %229 : vector<8x128xf32>
    %232 = arith.divf %230, %231 : vector<8x128xf32>
    %233 = arith.mulf %224, %195 : vector<8x128xf32>
    %234 = arith.mulf %218, %226 : vector<8x128xf32>
    %235 = arith.addf %233, %234 : vector<8x128xf32>
    %236 = math.tanh %235 : vector<8x128xf32>
    %237 = arith.mulf %232, %236 : vector<8x128xf32>
    %238 = arith.index_cast %c5_i32 : i32 to index
    %c0_62 = arith.constant 0 : index
    %c0_63 = arith.constant 0 : index
    %239 = vector.load %arg4[%238, %c0_62, %c0_63] : memref<8x8x128xf32, #tpu.memory_space<vmem>>, vector<1x8x128xf32>
    %240 = vector.shape_cast %239 : vector<1x8x128xf32> to vector<8x128xf32>
    %241 = vector.shape_cast %237 : vector<8x128xf32> to vector<1x8x128xf32>
    tpu.vector_store %arg4[%238, %c0_62, %c0_63], %241 {strides = array<i32>} : memref<8x8x128xf32, #tpu.memory_space<vmem>>, vector<1x8x128xf32>,
    %242 = arith.index_cast %c5_i32 : i32 to index
    %c0_64 = arith.constant 0 : index
    %c0_65 = arith.constant 0 : index
    %243 = vector.load %arg5[%242, %c0_64, %c0_65] : memref<8x8x128xf32, #tpu.memory_space<vmem>>, vector<1x8x128xf32>
    %244 = vector.shape_cast %243 : vector<1x8x128xf32> to vector<8x128xf32>
    %245 = vector.shape_cast %235 : vector<8x128xf32> to vector<1x8x128xf32>
    tpu.vector_store %arg5[%242, %c0_64, %c0_65], %245 {strides = array<i32>} : memref<8x8x128xf32, #tpu.memory_space<vmem>>, vector<1x8x128xf32>,
    %c6_i32 = arith.constant 6 : i32
    %246 = arith.index_cast %c6_i32 : i32 to index
    %c0_66 = arith.constant 0 : index
    %c0_67 = arith.constant 0 : index
    %247 = vector.load %arg2[%246, %c0_66, %c0_67] : memref<8x8x512xbf16, #tpu.memory_space<vmem>>, vector<1x8x512xbf16>
    %248 = vector.shape_cast %247 : vector<1x8x512xbf16> to vector<8x512xbf16>
    %249 = arith.extf %248 : vector<8x512xbf16> to vector<8x512xf32>
    %250 = arith.truncf %237 : vector<8x128xf32> to vector<8x128xbf16>
    %cst_68 = arith.constant dense<0.000000e+00> : vector<8x512xf32>
    %251 = tpu.matmul %250, %3, %cst_68 {dimension_numbers = #tpu.dot_dimension_numbers<[1], [0], [0], [1], [0, 0, 1, 1], [], []>} : vector<8x128xbf16>, vector<128x512xbf16>, vector<8x512xf32> -> vector<8x512xf32>
    %252 = arith.addf %249, %251 : vector<8x512xf32>
    %253 = vector.extract_strided_slice %252 {offsets = [0, 0], sizes = [8, 128], strides = [1, 1]} : vector<8x512xf32> to vector<8x128xf32>
    %254 = arith.negf %253 : vector<8x128xf32>
    %255 = math.exp %254 : vector<8x128xf32>
    %cst_69 = arith.constant 1.000000e+00 : f32
    %256 = vector.broadcast %cst_69 : f32 to vector<8x128xf32>
    %257 = arith.addf %256, %255 : vector<8x128xf32>
    %258 = arith.divf %256, %257 : vector<8x128xf32>
    %259 = vector.extract_strided_slice %252 {offsets = [0, 128], sizes = [8, 128], strides = [1, 1]} : vector<8x512xf32> to vector<8x128xf32>
    %260 = arith.negf %259 : vector<8x128xf32>
    %261 = math.exp %260 : vector<8x128xf32>
    %cst_70 = arith.constant 1.000000e+00 : f32
    %262 = vector.broadcast %cst_70 : f32 to vector<8x128xf32>
    %263 = arith.addf %262, %261 : vector<8x128xf32>
    %264 = arith.divf %262, %263 : vector<8x128xf32>
    %265 = vector.extract_strided_slice %252 {offsets = [0, 256], sizes = [8, 128], strides = [1, 1]} : vector<8x512xf32> to vector<8x128xf32>
    %266 = math.tanh %265 : vector<8x128xf32>
    %267 = vector.extract_strided_slice %252 {offsets = [0, 384], sizes = [8, 128], strides = [1, 1]} : vector<8x512xf32> to vector<8x128xf32>
    %268 = arith.negf %267 : vector<8x128xf32>
    %269 = math.exp %268 : vector<8x128xf32>
    %cst_71 = arith.constant 1.000000e+00 : f32
    %270 = vector.broadcast %cst_71 : f32 to vector<8x128xf32>
    %271 = arith.addf %270, %269 : vector<8x128xf32>
    %272 = arith.divf %270, %271 : vector<8x128xf32>
    %273 = arith.mulf %264, %235 : vector<8x128xf32>
    %274 = arith.mulf %258, %266 : vector<8x128xf32>
    %275 = arith.addf %273, %274 : vector<8x128xf32>
    %276 = math.tanh %275 : vector<8x128xf32>
    %277 = arith.mulf %272, %276 : vector<8x128xf32>
    %278 = arith.index_cast %c6_i32 : i32 to index
    %c0_72 = arith.constant 0 : index
    %c0_73 = arith.constant 0 : index
    %279 = vector.load %arg4[%278, %c0_72, %c0_73] : memref<8x8x128xf32, #tpu.memory_space<vmem>>, vector<1x8x128xf32>
    %280 = vector.shape_cast %279 : vector<1x8x128xf32> to vector<8x128xf32>
    %281 = vector.shape_cast %277 : vector<8x128xf32> to vector<1x8x128xf32>
    tpu.vector_store %arg4[%278, %c0_72, %c0_73], %281 {strides = array<i32>} : memref<8x8x128xf32, #tpu.memory_space<vmem>>, vector<1x8x128xf32>,
    %282 = arith.index_cast %c6_i32 : i32 to index
    %c0_74 = arith.constant 0 : index
    %c0_75 = arith.constant 0 : index
    %283 = vector.load %arg5[%282, %c0_74, %c0_75] : memref<8x8x128xf32, #tpu.memory_space<vmem>>, vector<1x8x128xf32>
    %284 = vector.shape_cast %283 : vector<1x8x128xf32> to vector<8x128xf32>
    %285 = vector.shape_cast %275 : vector<8x128xf32> to vector<1x8x128xf32>
    tpu.vector_store %arg5[%282, %c0_74, %c0_75], %285 {strides = array<i32>} : memref<8x8x128xf32, #tpu.memory_space<vmem>>, vector<1x8x128xf32>,
    %c7_i32 = arith.constant 7 : i32
    %286 = arith.index_cast %c7_i32 : i32 to index
    %c0_76 = arith.constant 0 : index
    %c0_77 = arith.constant 0 : index
    %287 = vector.load %arg2[%286, %c0_76, %c0_77] : memref<8x8x512xbf16, #tpu.memory_space<vmem>>, vector<1x8x512xbf16>
    %288 = vector.shape_cast %287 : vector<1x8x512xbf16> to vector<8x512xbf16>
    %289 = arith.extf %288 : vector<8x512xbf16> to vector<8x512xf32>
    %290 = arith.truncf %277 : vector<8x128xf32> to vector<8x128xbf16>
    %cst_78 = arith.constant dense<0.000000e+00> : vector<8x512xf32>
    %291 = tpu.matmul %290, %3, %cst_78 {dimension_numbers = #tpu.dot_dimension_numbers<[1], [0], [0], [1], [0, 0, 1, 1], [], []>} : vector<8x128xbf16>, vector<128x512xbf16>, vector<8x512xf32> -> vector<8x512xf32>
    %292 = arith.addf %289, %291 : vector<8x512xf32>
    %293 = vector.extract_strided_slice %292 {offsets = [0, 0], sizes = [8, 128], strides = [1, 1]} : vector<8x512xf32> to vector<8x128xf32>
    %294 = arith.negf %293 : vector<8x128xf32>
    %295 = math.exp %294 : vector<8x128xf32>
    %cst_79 = arith.constant 1.000000e+00 : f32
    %296 = vector.broadcast %cst_79 : f32 to vector<8x128xf32>
    %297 = arith.addf %296, %295 : vector<8x128xf32>
    %298 = arith.divf %296, %297 : vector<8x128xf32>
    %299 = vector.extract_strided_slice %292 {offsets = [0, 128], sizes = [8, 128], strides = [1, 1]} : vector<8x512xf32> to vector<8x128xf32>
    %300 = arith.negf %299 : vector<8x128xf32>
    %301 = math.exp %300 : vector<8x128xf32>
    %cst_80 = arith.constant 1.000000e+00 : f32
    %302 = vector.broadcast %cst_80 : f32 to vector<8x128xf32>
    %303 = arith.addf %302, %301 : vector<8x128xf32>
    %304 = arith.divf %302, %303 : vector<8x128xf32>
    %305 = vector.extract_strided_slice %292 {offsets = [0, 256], sizes = [8, 128], strides = [1, 1]} : vector<8x512xf32> to vector<8x128xf32>
    %306 = math.tanh %305 : vector<8x128xf32>
    %307 = vector.extract_strided_slice %292 {offsets = [0, 384], sizes = [8, 128], strides = [1, 1]} : vector<8x512xf32> to vector<8x128xf32>
    %308 = arith.negf %307 : vector<8x128xf32>
    %309 = math.exp %308 : vector<8x128xf32>
    %cst_81 = arith.constant 1.000000e+00 : f32
    %310 = vector.broadcast %cst_81 : f32 to vector<8x128xf32>
    %311 = arith.addf %310, %309 : vector<8x128xf32>
    %312 = arith.divf %310, %311 : vector<8x128xf32>
    %313 = arith.mulf %304, %275 : vector<8x128xf32>
    %314 = arith.mulf %298, %306 : vector<8x128xf32>
    %315 = arith.addf %313, %314 : vector<8x128xf32>
    %316 = math.tanh %315 : vector<8x128xf32>
    %317 = arith.mulf %312, %316 : vector<8x128xf32>
    %318 = arith.index_cast %c7_i32 : i32 to index
    %c0_82 = arith.constant 0 : index
    %c0_83 = arith.constant 0 : index
    %319 = vector.load %arg4[%318, %c0_82, %c0_83] : memref<8x8x128xf32, #tpu.memory_space<vmem>>, vector<1x8x128xf32>
    %320 = vector.shape_cast %319 : vector<1x8x128xf32> to vector<8x128xf32>
    %321 = vector.shape_cast %317 : vector<8x128xf32> to vector<1x8x128xf32>
    tpu.vector_store %arg4[%318, %c0_82, %c0_83], %321 {strides = array<i32>} : memref<8x8x128xf32, #tpu.memory_space<vmem>>, vector<1x8x128xf32>,
    %322 = arith.index_cast %c7_i32 : i32 to index
    %c0_84 = arith.constant 0 : index
    %c0_85 = arith.constant 0 : index
    %323 = vector.load %arg5[%322, %c0_84, %c0_85] : memref<8x8x128xf32, #tpu.memory_space<vmem>>, vector<1x8x128xf32>
    %324 = vector.shape_cast %323 : vector<1x8x128xf32> to vector<8x128xf32>
    %325 = vector.shape_cast %315 : vector<8x128xf32> to vector<1x8x128xf32>
    tpu.vector_store %arg5[%322, %c0_84, %c0_85], %325 {strides = array<i32>} : memref<8x8x128xf32, #tpu.memory_space<vmem>>, vector<1x8x128xf32>,
    %c8_i32 = arith.constant 8 : i32
    %c0_86 = arith.constant 0 : index
    %c0_87 = arith.constant 0 : index
    %326 = vector.load %arg6[%c0_86, %c0_87] : memref<8x128xf32, #tpu.memory_space<vmem>>, vector<8x128xf32>
    tpu.vector_store %arg6[%c0_86, %c0_87], %317 {strides = array<i32>} : memref<8x128xf32, #tpu.memory_space<vmem>>, vector<8x128xf32>,
    %c0_88 = arith.constant 0 : index
    %c0_89 = arith.constant 0 : index
    %327 = vector.load %arg7[%c0_88, %c0_89] : memref<8x128xf32, #tpu.memory_space<vmem>>, vector<8x128xf32>
    tpu.vector_store %arg7[%c0_88, %c0_89], %315 {strides = array<i32>} : memref<8x128xf32, #tpu.memory_space<vmem>>, vector<8x128xf32>,
    return
  }
  func.func @transform_0(%arg0: i32, %arg1: i32) -> (i32, i32, i32) {
    %c0_i32 = arith.constant 0 : i32
    %c0_i32_0 = arith.constant 0 : i32
    return %arg1, %arg0, %c0_i32 : i32, i32, i32
  }
  func.func @transform_1(%arg0: i32, %arg1: i32) -> (i32, i32) {
    %c0_i32 = arith.constant 0 : i32
    %c0_i32_0 = arith.constant 0 : i32
    %c0_i32_1 = arith.constant 0 : i32
    return %c0_i32, %c0_i32_0 : i32, i32
  }
  func.func @transform_2(%arg0: i32, %arg1: i32) -> (i32, i32, i32) {
    %c0_i32 = arith.constant 0 : i32
    %c0_i32_0 = arith.constant 0 : i32
    return %arg1, %arg0, %c0_i32 : i32, i32, i32
  }
  func.func @transform_3(%arg0: i32, %arg1: i32) -> (i32, i32, i32) {
    %c0_i32 = arith.constant 0 : i32
    %c0_i32_0 = arith.constant 0 : i32
    return %arg1, %arg0, %c0_i32 : i32, i32, i32
  }
}

</mosaic_0001>

<bundles_post_ra>
// kernel: _lambda_.2
= control target key start
LH: loop header
LB: loop body
LE: loop exit
PB: predicated region body
PF: predicated region fallthrough
CT: control target
= control target key end

     0   :  { %8 = vsyncpa [#allocation3], 0  ;;  %s684_s12 = smov [#allocation2]   ;;  %s822_s0 = inlined_call_operand.vmem [shape: bf16[64,128], index: 0, kind: input, shape index: {}]   ;;  %s823_s1 = inlined_call_operand.hbm [shape: bf16[128,512], index: 1, kind: input, shape index: {}]   ;;  %s824_s2 = inlined_call_operand.vmem [shape: f32[1,512], index: 2, kind: input, shape index: {}]   ;;  %s825_s3 = inlined_call_operand.vmem [shape: bf16[64,512], index: 3, kind: output, shape index: {}]  }
   0x1   :  { %s16_s13 = sshll.u32 %s684_s12, 4  ;;  %s17_s13 = int_to_ptr.vmem [resolvable:$true] %s16_s13 }
   0x2   :  { %s670_s14 = scalar_lea.vmem %s17_s13, 4096  ;;  %p675_p1 = scmp.lt.s32.totalorder %s17_s13, %s17_s13 }
   0x3   :  { %p671_p0 = scmp.ne.s32.totalorder %s17_s13, %s670_s14  ;;  %p676_p2 = scmp.lt.s32.totalorder %s670_s14, %s670_s14 }
   0x5   :  { %p677_p3 = por %p676_p2, %p675_p1 }
   0x7   :  { %p678_p4 = pnand %p677_p3, %p671_p0 }
   0x9   :  { %681 = shalt.err (!%p678_p4)
}
   0xa   :  { %s685_s15 = smov 256   ;;  %s686_s16 = smov 16  }
   0xb   :  { %22 = dma.hbm_to_vmem [thread:$0]  %s823_s1, 4096, %s17_s13, [#allocation3], %s685_s15, %s685_s15, %s686_s16  }
   0xc   :  { %682 = dma.done.wait [#allocation3], 4096  }
   0xd   :  { %683 = vsyncadd [#allocation3], 4294963200  ;;  %v687_v0 = vmov 0   ;;  %v610_v1 = vld [vmem:[#allocation2 + $0xe4] ss:$16 sps:$4 sm:$0xff]   ;;  %v659_v34 = vld [vmem:[%s822_s0 + $0x8] sm:$0xff]   ;;  %v71_v37 = vlaneseq }
   0xe   :  { %307 = vmatprep.mubr.bf16.mxu0 %v687_v0  ;;  %380 = vmatprep.mubr.bf16.mxu1 %v687_v0  ;;  %v612_v2 = vld [vmem:[#allocation2 + $0xec] ss:$16 sps:$4 sm:$0xff]   ;;  %v614_v3 = vld [vmem:[#allocation2 + $0xe0] ss:$16 sps:$4 sm:$0xff]   ;;  %v615_v4 = vld [vmem:[#allocation2 + $0xe8] ss:$16 sps:$4 sm:$0xff]  }
   0xf   :  { %275 = vmatprep.subr.bf16.mxu0 %v610_v1  ;;  %348 = vmatprep.subr.bf16.mxu1 %v612_v2  ;;  %v616_v5 = vld [vmem:[#allocation2 + $0xc4] ss:$16 sps:$4 sm:$0xff]   ;;  %v618_v6 = vld [vmem:[#allocation2 + $0xcc] ss:$16 sps:$4 sm:$0xff]   ;;  %v620_v7 = vld [vmem:[#allocation2 + $0xc0] ss:$16 sps:$4 sm:$0xff]  }
  0x10   :  { %276 = vmatpush1.bf16.msra.mxu0 %v614_v3  ;;  %349 = vmatpush1.bf16.msra.mxu1 %v615_v4  ;;  %v621_v8 = vld [vmem:[#allocation2 + $0xc8] ss:$16 sps:$4 sm:$0xff]   ;;  %v622_v9 = vld [vmem:[#allocation2 + $0xa4] ss:$16 sps:$4 sm:$0xff]   ;;  %v624_v10 = vld [vmem:[#allocation2 + $0xac] ss:$16 sps:$4 sm:$0xff]  }
  0x11   :  { %277 = vmatprep.subr.bf16.mxu0 %v616_v5  ;;  %350 = vmatprep.subr.bf16.mxu1 %v618_v6  ;;  %v626_v11 = vld [vmem:[#allocation2 + $0xa0] ss:$16 sps:$4 sm:$0xff]   ;;  %v627_v12 = vld [vmem:[#allocation2 + $0xa8] ss:$16 sps:$4 sm:$0xff]   ;;  %v628_v13 = vld [vmem:[#allocation2 + $0x84] ss:$16 sps:$4 sm:$0xff]  }
  0x12   :  { %v630_v14 = vld [vmem:[#allocation2 + $0x8c] ss:$16 sps:$4 sm:$0xff]   ;;  %v632_v15 = vld [vmem:[#allocation2 + $0x80] ss:$16 sps:$4 sm:$0xff]   ;;  %v633_v16 = vld [vmem:[#allocation2 + $0x88] ss:$16 sps:$4 sm:$0xff]  }
  0x13   :  { %v634_v17 = vld [vmem:[#allocation2 + $0x64] ss:$16 sps:$4 sm:$0xff]   ;;  %v636_v18 = vld [vmem:[#allocation2 + $0x6c] ss:$16 sps:$4 sm:$0xff]   ;;  %v638_v19 = vld [vmem:[#allocation2 + $0x60] ss:$16 sps:$4 sm:$0xff]  }
  0x14   :  { %278 = vmatpush1.bf16.msra.mxu0 %v620_v7  ;;  %351 = vmatpush1.bf16.msra.mxu1 %v621_v8  ;;  %v639_v20 = vld [vmem:[#allocation2 + $0x68] ss:$16 sps:$4 sm:$0xff]   ;;  %v640_v21 = vld [vmem:[#allocation2 + $0x44] ss:$16 sps:$4 sm:$0xff]   ;;  %v642_v22 = vld [vmem:[#allocation2 + $0x4c] ss:$16 sps:$4 sm:$0xff]  }
  0x15   :  { %279 = vmatprep.subr.bf16.mxu0 %v622_v9  ;;  %352 = vmatprep.subr.bf16.mxu1 %v624_v10  ;;  %v644_v23 = vld [vmem:[#allocation2 + $0x40] ss:$16 sps:$4 sm:$0xff]   ;;  %v645_v24 = vld [vmem:[#allocation2 + $0x48] ss:$16 sps:$4 sm:$0xff]   ;;  %v646_v25 = vld [vmem:[#allocation2 + $0x24] ss:$16 sps:$4 sm:$0xff]  }
  0x16   :  { %v648_v26 = vld [vmem:[#allocation2 + $0x2c] ss:$16 sps:$4 sm:$0xff]   ;;  %v650_v27 = vld [vmem:[#allocation2 + $0x20] ss:$16 sps:$4 sm:$0xff]   ;;  %v651_v28 = vld [vmem:[#allocation2 + $0x28] ss:$16 sps:$4 sm:$0xff]  }
  0x17   :  { %v652_v29 = vld [vmem:[#allocation2 + $0x4] ss:$16 sps:$4 sm:$0xff]   ;;  %v654_v30 = vld [vmem:[#allocation2 + $0xc] ss:$16 sps:$4 sm:$0xff]   ;;  %v656_v31 = vld [vmem:[#allocation2] ss:$16 sps:$4 sm:$0xff]  }
  0x18   :  { %280 = vmatpush1.bf16.msra.mxu0 %v626_v11  ;;  %353 = vmatpush1.bf16.msra.mxu1 %v627_v12  ;;  %v657_v32 = vld [vmem:[#allocation2 + $0x8] ss:$16 sps:$4 sm:$0xff]   ;;  %v658_v33 = vld [vmem:[%s822_s0] sm:$0xff]   ;;  %v660_v35 = vld [vmem:[%s822_s0 + $0x10] sm:$0xff]   ;;  %v72_v38 = vshrl.u32 %v71_v37, 7 }
  0x19   :  { %281 = vmatprep.subr.bf16.mxu0 %v628_v13  ;;  %354 = vmatprep.subr.bf16.mxu1 %v630_v14  ;;  %v661_v36 = vld [vmem:[%s822_s0 + $0x18] sm:$0xff]   ;;  %v69_v43 = vld [vmem:[%s824_s2] sm:$0xf] }
  0x1a   :  { %v73_v39 = vsub.s32 0, %v72_v38  ;;  %v81_v40 = vsub.s32 2, %v72_v38  ;;  %v77_v41 = vsub.s32 1, %v72_v38  ;;  %v85_v42 = vsub.s32 3, %v72_v38 }
  0x1c   :  { %282 = vmatpush1.bf16.msra.mxu0 %v632_v15  ;;  %355 = vmatpush1.bf16.msra.mxu1 %v633_v16  ;;  %v734_v44 = vrot.slane %v69_v43, %v73_v39  ;;  %v736_v45 = vrot.slane %v69_v43, %v81_v40  ;;  %v738_v46 = vrot.slane %v69_v43, %v77_v41 }
  0x1d   :  { %283 = vmatprep.subr.bf16.mxu0 %v634_v17  ;;  %356 = vmatprep.subr.bf16.mxu1 %v636_v18  ;;  %v740_v47 = vrot.slane %v69_v43, %v85_v42 }
  0x20   :  { %284 = vmatpush1.bf16.msra.mxu0 %v638_v19  ;;  %357 = vmatpush1.bf16.msra.mxu1 %v639_v20 }
  0x21   :  { %285 = vmatprep.subr.bf16.mxu0 %v640_v21  ;;  %358 = vmatprep.subr.bf16.mxu1 %v642_v22 }
  0x24   :  { %286 = vmatpush1.bf16.msra.mxu0 %v644_v23  ;;  %359 = vmatpush1.bf16.msra.mxu1 %v645_v24 }
  0x25   :  { %287 = vmatprep.subr.bf16.mxu0 %v646_v25  ;;  %360 = vmatprep.subr.bf16.mxu1 %v648_v26 }
  0x28   :  { %288 = vmatpush1.bf16.msra.mxu0 %v650_v27  ;;  %361 = vmatpush1.bf16.msra.mxu1 %v651_v28 }
  0x29   :  { %289 = vmatprep.subr.bf16.mxu0 %v652_v29  ;;  %362 = vmatprep.subr.bf16.mxu1 %v654_v30 }
  0x2c   :  { %290 = vmatpush1.bf16.msra.mxu0 %v656_v31  ;;  %363 = vmatpush1.bf16.msra.mxu1 %v657_v32 }
  0x2f   :  { %308 = vmatmul.mubr.bf16.vlgmr.msra.gmra.mxu0 %v658_v33  ;;  %381 = vmatmul.mubr.bf16.vlgmr.msra.gmra.mxu1 %v658_v33 }
  0x30   :  { %317 = vmatprep.mubr.bf16.mxu0 %v687_v0  ;;  %390 = vmatprep.mubr.bf16.mxu1 %v687_v0 }
  0x37   :  { %318 = vmatmul.mubr.bf16.gmra.mxu0 %v659_v34  ;;  %391 = vmatmul.mubr.bf16.gmra.mxu1 %v659_v34 }
  0x38   :  { %327 = vmatprep.mubr.bf16.mxu0 %v687_v0  ;;  %400 = vmatprep.mubr.bf16.mxu1 %v687_v0 }
  0x3f   :  { %328 = vmatmul.mubr.bf16.gmra.mxu0 %v660_v35  ;;  %401 = vmatmul.mubr.bf16.gmra.mxu1 %v660_v35 }
  0x40   :  { %337 = vmatprep.mubr.bf16.mxu0 %v687_v0  ;;  %410 = vmatprep.mubr.bf16.mxu1 %v687_v0 }
  0x47   :  { %338 = vmatmul.mubr.bf16.gmra.mxu0 %v661_v36  ;;  %411 = vmatmul.mubr.bf16.gmra.mxu1 %v661_v36 }
  0xef   :  { %v309_v48 = vpop.f32.mrf.mxu0  ;;  %v382_v49 = vpop.f32.mrf.mxu1 }
  0xf0   :  { %v310_v52 = vadd.f32 %v309_v48, %v734_v44  ;;  %v383_v53 = vadd.f32 %v382_v49, %v736_v45 }
  0xf1   :  { %v311_v50 = vpop.f32.mrf.mxu0  ;;  %v384_v51 = vpop.f32.mrf.mxu1 }
  0xf2   :  { %v312_v54 = vadd.f32 %v311_v50, %v738_v46  ;;  %v385_v55 = vadd.f32 %v384_v51, %v740_v47 }
  0xf3   :  { %v313_v56 = vpop.f32.mrf.mxu0  ;;  %v386_v57 = vpop.f32.mrf.mxu1 }
  0xf4   :  { %v590_v58 = vpack.c.bf16 %v312_v54, %v310_v52  ;;  %v591_v59 = vpack.c.bf16 %v385_v55, %v383_v53  ;;  %v314_v62 = vadd.f32 %v313_v56, %v734_v44  ;;  %v387_v63 = vadd.f32 %v386_v57, %v736_v45 }
  0xf5   :  { %v315_v60 = vpop.f32.mrf.mxu0  ;;  %v388_v61 = vpop.f32.mrf.mxu1 }
  0xf6   :  { %517 = vst [vmem:[%s825_s3] sm:$0xff] %v590_v58  ;;  %518 = vst [vmem:[%s825_s3 + $0x8] sm:$0xff] %v591_v59  ;;  %v316_v0 = vadd.f32 %v315_v60, %v738_v46  ;;  %v389_v1 = vadd.f32 %v388_v61, %v740_v47 }
  0xf7   :  { %v319_v2 = vpop.f32.mrf.mxu0  ;;  %v392_v3 = vpop.f32.mrf.mxu1 }
  0xf8   :  { %v592_v4 = vpack.c.bf16 %v316_v0, %v314_v62  ;;  %v593_v5 = vpack.c.bf16 %v389_v1, %v387_v63  ;;  %v320_v8 = vadd.f32 %v319_v2, %v734_v44  ;;  %v393_v9 = vadd.f32 %v392_v3, %v736_v45 }
  0xf9   :  { %v321_v6 = vpop.f32.mrf.mxu0  ;;  %v394_v7 = vpop.f32.mrf.mxu1 }
  0xfa   :  { %519 = vst [vmem:[%s825_s3 + $0x10] sm:$0xff] %v592_v4  ;;  %520 = vst [vmem:[%s825_s3 + $0x18] sm:$0xff] %v593_v5  ;;  %v322_v10 = vadd.f32 %v321_v6, %v738_v46  ;;  %v395_v11 = vadd.f32 %v394_v7, %v740_v47 }
  0xfb   :  { %v323_v12 = vpop.f32.mrf.mxu0  ;;  %v396_v13 = vpop.f32.mrf.mxu1 }
  0xfc   :  { %v594_v14 = vpack.c.bf16 %v322_v10, %v320_v8  ;;  %v595_v15 = vpack.c.bf16 %v395_v11, %v393_v9  ;;  %v324_v18 = vadd.f32 %v323_v12, %v734_v44  ;;  %v397_v19 = vadd.f32 %v396_v13, %v736_v45 }
  0xfd   :  { %v325_v16 = vpop.f32.mrf.mxu0  ;;  %v398_v17 = vpop.f32.mrf.mxu1 }
  0xfe   :  { %521 = vst [vmem:[%s825_s3 + $0x20] sm:$0xff] %v594_v14  ;;  %522 = vst [vmem:[%s825_s3 + $0x28] sm:$0xff] %v595_v15  ;;  %v326_v20 = vadd.f32 %v325_v16, %v738_v46  ;;  %v399_v21 = vadd.f32 %v398_v17, %v740_v47 }
  0xff   :  { %v329_v22 = vpop.f32.mrf.mxu0  ;;  %v402_v23 = vpop.f32.mrf.mxu1 }
 0x100   :  { %v596_v24 = vpack.c.bf16 %v326_v20, %v324_v18  ;;  %v597_v25 = vpack.c.bf16 %v399_v21, %v397_v19  ;;  %v330_v28 = vadd.f32 %v329_v22, %v734_v44  ;;  %v403_v29 = vadd.f32 %v402_v23, %v736_v45 }
 0x101   :  { %v331_v26 = vpop.f32.mrf.mxu0  ;;  %v404_v27 = vpop.f32.mrf.mxu1 }
 0x102   :  { %523 = vst [vmem:[%s825_s3 + $0x30] sm:$0xff] %v596_v24  ;;  %524 = vst [vmem:[%s825_s3 + $0x38] sm:$0xff] %v597_v25  ;;  %v332_v30 = vadd.f32 %v331_v26, %v738_v46  ;;  %v405_v31 = vadd.f32 %v404_v27, %v740_v47 }
 0x103   :  { %v333_v32 = vpop.f32.mrf.mxu0  ;;  %v406_v33 = vpop.f32.mrf.mxu1 }
 0x104   :  { %v598_v34 = vpack.c.bf16 %v332_v30, %v330_v28  ;;  %v599_v35 = vpack.c.bf16 %v405_v31, %v403_v29  ;;  %v334_v38 = vadd.f32 %v333_v32, %v734_v44  ;;  %v407_v39 = vadd.f32 %v406_v33, %v736_v45 }
 0x105   :  { %v335_v36 = vpop.f32.mrf.mxu0  ;;  %v408_v37 = vpop.f32.mrf.mxu1 }
 0x106   :  { %525 = vst [vmem:[%s825_s3 + $0x40] sm:$0xff] %v598_v34  ;;  %526 = vst [vmem:[%s825_s3 + $0x48] sm:$0xff] %v599_v35  ;;  %v336_v40 = vadd.f32 %v335_v36, %v738_v46  ;;  %v409_v41 = vadd.f32 %v408_v37, %v740_v47 }
 0x107   :  { %v339_v42 = vpop.f32.mrf.mxu0  ;;  %v412_v43 = vpop.f32.mrf.mxu1 }
 0x108   :  { %v600_v48 = vpack.c.bf16 %v336_v40, %v334_v38  ;;  %v601_v49 = vpack.c.bf16 %v409_v41, %v407_v39  ;;  %v340_v52 = vadd.f32 %v339_v42, %v734_v44  ;;  %v413_v53 = vadd.f32 %v412_v43, %v736_v45 }
 0x109   :  { %v341_v50 = vpop.f32.mrf.mxu0  ;;  %v414_v51 = vpop.f32.mrf.mxu1 }
 0x10a   :  { %527 = vst [vmem:[%s825_s3 + $0x50] sm:$0xff] %v600_v48  ;;  %528 = vst [vmem:[%s825_s3 + $0x58] sm:$0xff] %v601_v49  ;;  %v342_v54 = vadd.f32 %v341_v50, %v738_v46  ;;  %v415_v55 = vadd.f32 %v414_v51, %v740_v47 }
 0x10b   :  { %v343_v56 = vpop.f32.mrf.mxu0  ;;  %v416_v57 = vpop.f32.mrf.mxu1 }
 0x10c   :  { %v602_v58 = vpack.c.bf16 %v342_v54, %v340_v52  ;;  %v603_v59 = vpack.c.bf16 %v415_v55, %v413_v53  ;;  %v344_v62 = vadd.f32 %v343_v56, %v734_v44  ;;  %v417_v63 = vadd.f32 %v416_v57, %v736_v45 }
 0x10d   :  { %v345_v60 = vpop.f32.mrf.mxu0  ;;  %v418_v61 = vpop.f32.mrf.mxu1 }
 0x10e   :  { %529 = vst [vmem:[%s825_s3 + $0x60] sm:$0xff] %v602_v58  ;;  %530 = vst [vmem:[%s825_s3 + $0x68] sm:$0xff] %v603_v59  ;;  %v346_v0 = vadd.f32 %v345_v60, %v738_v46  ;;  %v419_v1 = vadd.f32 %v418_v61, %v740_v47 }
 0x110   :  { %v604_v2 = vpack.c.bf16 %v346_v0, %v344_v62  ;;  %v605_v3 = vpack.c.bf16 %v419_v1, %v417_v63 }
 0x112   :  { %531 = vst [vmem:[%s825_s3 + $0x70] sm:$0xff] %v604_v2  ;;  %532 = vst [vmem:[%s825_s3 + $0x78] sm:$0xff] %v605_v3 }
 0x113   :  { %537 = vsyncpa [#allocation3], 1 }

// kernel: _lambda_.3
= control target key start
LH: loop header
LB: loop body
LE: loop exit
PB: predicated region body
PF: predicated region fallthrough
CT: control target
= control target key end

     0   :  { %v1491_v1 = vmov 0   ;;  %v1492_v33 = vmov 0.0|0.0   ;;  %s2147_s1 = inlined_call_operand.vmem [shape: bf16[128,512], index: 1, kind: input, shape index: {}]   ;;  %s2148_s0 = inlined_call_operand.vmem [shape: bf16[8,8,512], index: 0, kind: input, shape index: {}]   ;;  %s2149_s3 = inlined_call_operand.vmem [shape: f32[8,8,128], index: 3, kind: output, shape index: {1}]   ;;  %s2150_s2 = inlined_call_operand.vmem [shape: f32[8,8,128], index: 2, kind: output, shape index: {0}]  }
   0x1   :  { %v1516_v0 = vld [vmem:[%s2147_s1 + $0xe4] ss:$16 sps:$4 sm:$0xff]   ;;  %253 = vmatprep.mubr.bf16.mxu0 %v1491_v1  ;;  %294 = vmatprep.mubr.bf16.mxu1 %v1491_v1  ;;  %v1523_v2 = vld [vmem:[%s2147_s1 + $0xe0] ss:$16 sps:$4 sm:$0xff]   ;;  %v1546_v6 = vld [vmem:[%s2147_s1 + $0xec] ss:$16 sps:$4 sm:$0xff]  }
   0x2   :  { %221 = vmatprep.subr.bf16.mxu0 %v1516_v0  ;;  %v1529_v3 = vld [vmem:[%s2147_s1 + $0xc4] ss:$16 sps:$4 sm:$0xff]   ;;  %v1535_v4 = vld [vmem:[%s2147_s1 + $0xc0] ss:$16 sps:$4 sm:$0xff]   ;;  %v1551_v7 = vld [vmem:[%s2147_s1 + $0xe8] ss:$16 sps:$4 sm:$0xff]   ;;  %262 = vmatprep.subr.bf16.mxu1 %v1546_v6 }
   0x3   :  { %222 = vmatpush1.bf16.msra.mxu0 %v1523_v2  ;;  %v1541_v5 = vld [vmem:[%s2147_s1 + $0xa4] ss:$16 sps:$4 sm:$0xff]   ;;  %v1557_v8 = vld [vmem:[%s2147_s1 + $0xa0] ss:$16 sps:$4 sm:$0xff]   ;;  %263 = vmatpush1.bf16.msra.mxu1 %v1551_v7  ;;  %v1570_v10 = vld [vmem:[%s2147_s1 + $0xcc] ss:$16 sps:$4 sm:$0xff]  }
   0x4   :  { %223 = vmatprep.subr.bf16.mxu0 %v1529_v3  ;;  %v1564_v9 = vld [vmem:[%s2147_s1 + $0x84] ss:$16 sps:$4 sm:$0xff]   ;;  %v1575_v11 = vld [vmem:[%s2147_s1 + $0xc8] ss:$16 sps:$4 sm:$0xff]   ;;  %264 = vmatprep.subr.bf16.mxu1 %v1570_v10  ;;  %v1582_v12 = vld [vmem:[%s2147_s1 + $0x80] ss:$16 sps:$4 sm:$0xff]  }
   0x5   :  { %v1587_v13 = vld [vmem:[%s2147_s1 + $0x64] ss:$16 sps:$4 sm:$0xff]   ;;  %v1592_v14 = vld [vmem:[%s2147_s1 + $0xac] ss:$16 sps:$4 sm:$0xff]   ;;  %v1599_v15 = vld [vmem:[%s2147_s1 + $0xa8] ss:$16 sps:$4 sm:$0xff]  }
   0x6   :  { %v1605_v16 = vld [vmem:[%s2147_s1 + $0x8c] ss:$16 sps:$4 sm:$0xff]   ;;  %v1611_v17 = vld [vmem:[%s2147_s1 + $0x60] ss:$16 sps:$4 sm:$0xff]   ;;  %v1617_v18 = vld [vmem:[%s2147_s1 + $0x44] ss:$16 sps:$4 sm:$0xff]  }
   0x7   :  { %224 = vmatpush1.bf16.msra.mxu0 %v1535_v4  ;;  %265 = vmatpush1.bf16.msra.mxu1 %v1575_v11  ;;  %v1623_v19 = vld [vmem:[%s2147_s1 + $0x88] ss:$16 sps:$4 sm:$0xff]   ;;  %v1629_v20 = vld [vmem:[%s2147_s1 + $0x6c] ss:$16 sps:$4 sm:$0xff]   ;;  %v1635_v21 = vld [vmem:[%s2147_s1 + $0x40] ss:$16 sps:$4 sm:$0xff]  }
   0x8   :  { %225 = vmatprep.subr.bf16.mxu0 %v1541_v5  ;;  %266 = vmatprep.subr.bf16.mxu1 %v1592_v14  ;;  %v1640_v22 = vld [vmem:[%s2147_s1 + $0x24] ss:$16 sps:$4 sm:$0xff]   ;;  %v1647_v23 = vld [vmem:[%s2147_s1 + $0x68] ss:$16 sps:$4 sm:$0xff]   ;;  %v1653_v24 = vld [vmem:[%s2147_s1 + $0x4c] ss:$16 sps:$4 sm:$0xff]  }
   0x9   :  { %v1659_v25 = vld [vmem:[%s2147_s1 + $0x20] ss:$16 sps:$4 sm:$0xff]   ;;  %v1665_v26 = vld [vmem:[%s2147_s1 + $0x4] ss:$16 sps:$4 sm:$0xff]   ;;  %v1671_v27 = vld [vmem:[%s2147_s1 + $0x48] ss:$16 sps:$4 sm:$0xff]  }
   0xa   :  { %v1677_v28 = vld [vmem:[%s2147_s1 + $0x2c] ss:$16 sps:$4 sm:$0xff]   ;;  %v1683_v29 = vld [vmem:[%s2147_s1] ss:$16 sps:$4 sm:$0xff]   ;;  %v1690_v30 = vld [vmem:[%s2147_s1 + $0x28] ss:$16 sps:$4 sm:$0xff]  }
   0xb   :  { %226 = vmatpush1.bf16.msra.mxu0 %v1557_v8  ;;  %267 = vmatpush1.bf16.msra.mxu1 %v1599_v15  ;;  %v1696_v31 = vld [vmem:[%s2147_s1 + $0xc] ss:$16 sps:$4 sm:$0xff]   ;;  %v1703_v32 = vld [vmem:[%s2147_s1 + $0x8] ss:$16 sps:$4 sm:$0xff]   ;;  %v54_v34 = vld [vmem:[%s2148_s0] sm:$0xff] }
   0xc   :  { %227 = vmatprep.subr.bf16.mxu0 %v1564_v9  ;;  %268 = vmatprep.subr.bf16.mxu1 %v1605_v16  ;;  %v56_v35 = vunpack.c.l.bf16 %v54_v34  ;;  %v57_v36 = vunpack.c.h.bf16 %v54_v34  ;;  %v55_v44 = vld [vmem:[%s2148_s0 + $0x8] sm:$0xff] }
   0xd   :  { %v59_v48 = vunpack.c.h.bf16 %v55_v44  ;;  %v58_v50 = vunpack.c.l.bf16 %v55_v44 }
   0xf   :  { %228 = vmatpush1.bf16.msra.mxu0 %v1582_v12  ;;  %269 = vmatpush1.bf16.msra.mxu1 %v1623_v19 }
  0x10   :  { %229 = vmatprep.subr.bf16.mxu0 %v1587_v13  ;;  %270 = vmatprep.subr.bf16.mxu1 %v1629_v20 }
  0x13   :  { %230 = vmatpush1.bf16.msra.mxu0 %v1611_v17  ;;  %271 = vmatpush1.bf16.msra.mxu1 %v1647_v23 }
  0x14   :  { %231 = vmatprep.subr.bf16.mxu0 %v1617_v18  ;;  %272 = vmatprep.subr.bf16.mxu1 %v1653_v24 }
  0x17   :  { %232 = vmatpush1.bf16.msra.mxu0 %v1635_v21  ;;  %273 = vmatpush1.bf16.msra.mxu1 %v1671_v27 }
  0x18   :  { %233 = vmatprep.subr.bf16.mxu0 %v1640_v22  ;;  %274 = vmatprep.subr.bf16.mxu1 %v1677_v28 }
  0x1b   :  { %234 = vmatpush1.bf16.msra.mxu0 %v1659_v25  ;;  %275 = vmatpush1.bf16.msra.mxu1 %v1690_v30 }
  0x1c   :  { %235 = vmatprep.subr.bf16.mxu0 %v1665_v26  ;;  %276 = vmatprep.subr.bf16.mxu1 %v1696_v31 }
  0x1f   :  { %236 = vmatpush1.bf16.msra.mxu0 %v1683_v29  ;;  %277 = vmatpush1.bf16.msra.mxu1 %v1703_v32 }
  0x20   :  { %341 = vmatprep.subr.bf16.mxu0 %v1516_v0  ;;  %382 = vmatprep.subr.bf16.mxu1 %v1546_v6 }
  0x22   :  { %254 = vmatmul.mubr.bf16.vlgmr.msra.gmra.mxu0 %v1492_v33  ;;  %295 = vmatmul.mubr.bf16.vlgmr.msra.gmra.mxu1 %v1492_v33 }
  0x23   :  { %342 = vmatpush1.bf16.msra.mxu0 %v1523_v2  ;;  %373 = vmatprep.mubr.bf16.mxu0 %v1491_v1 }
  0x24   :  { %343 = vmatprep.subr.bf16.mxu0 %v1529_v3  ;;  %383 = vmatpush1.bf16.msra.mxu1 %v1551_v7 }
  0x25   :  { %384 = vmatprep.subr.bf16.mxu1 %v1570_v10  ;;  %414 = vmatprep.mubr.bf16.mxu1 %v1491_v1 }
  0x27   :  { %344 = vmatpush1.bf16.msra.mxu0 %v1535_v4 }
  0x28   :  { %345 = vmatprep.subr.bf16.mxu0 %v1541_v5  ;;  %385 = vmatpush1.bf16.msra.mxu1 %v1575_v11 }
  0x29   :  { %386 = vmatprep.subr.bf16.mxu1 %v1592_v14 }
  0x2b   :  { %346 = vmatpush1.bf16.msra.mxu0 %v1557_v8 }
  0x2c   :  { %347 = vmatprep.subr.bf16.mxu0 %v1564_v9  ;;  %387 = vmatpush1.bf16.msra.mxu1 %v1599_v15 }
  0x2d   :  { %388 = vmatprep.subr.bf16.mxu1 %v1605_v16 }
  0x2f   :  { %348 = vmatpush1.bf16.msra.mxu0 %v1582_v12 }
  0x30   :  { %349 = vmatprep.subr.bf16.mxu0 %v1587_v13  ;;  %389 = vmatpush1.bf16.msra.mxu1 %v1623_v19 }
  0x31   :  { %390 = vmatprep.subr.bf16.mxu1 %v1629_v20 }
  0x33   :  { %350 = vmatpush1.bf16.msra.mxu0 %v1611_v17 }
  0x34   :  { %351 = vmatprep.subr.bf16.mxu0 %v1617_v18  ;;  %391 = vmatpush1.bf16.msra.mxu1 %v1647_v23 }
  0x35   :  { %392 = vmatprep.subr.bf16.mxu1 %v1653_v24 }
  0x37   :  { %352 = vmatpush1.bf16.msra.mxu0 %v1635_v21 }
  0x38   :  { %353 = vmatprep.subr.bf16.mxu0 %v1640_v22  ;;  %393 = vmatpush1.bf16.msra.mxu1 %v1671_v27 }
  0x39   :  { %394 = vmatprep.subr.bf16.mxu1 %v1677_v28 }
  0x3b   :  { %354 = vmatpush1.bf16.msra.mxu0 %v1659_v25 }
  0x3c   :  { %355 = vmatprep.subr.bf16.mxu0 %v1665_v26  ;;  %395 = vmatpush1.bf16.msra.mxu1 %v1690_v30 }
  0x3d   :  { %396 = vmatprep.subr.bf16.mxu1 %v1696_v31 }
  0x3f   :  { %356 = vmatpush1.bf16.msra.mxu0 %v1683_v29 }
  0x40   :  { %463 = vmatprep.subr.bf16.mxu0 %v1516_v0  ;;  %397 = vmatpush1.bf16.msra.mxu1 %v1703_v32 }
  0x41   :  { %504 = vmatprep.subr.bf16.mxu1 %v1546_v6 }
  0xe2   :  { %v255_v37 = vpop.f32.mrf.mxu0  ;;  %v296_v45 = vpop.f32.mrf.mxu1 }
  0xe3   :  { %v303_v38 = vadd.f32 %v255_v37, %v56_v35  ;;  %v305_v53 = vadd.f32 %v296_v45, %v58_v50 }
  0xe4   :  { %v257_v39 = vpop.f32.mrf.mxu0  ;;  %v298_v47 = vpop.f32.mrf.mxu1 }
  0xe5   :  { %v1229_v40 = vmul.f32 -1.442695, %v303_v38  ;;  %v304_v41 = vadd.f32 %v257_v39, %v57_v36  ;;  %v306_v52 = vadd.f32 %v298_v47, %v59_v48 }
  0xe6   :  { %v259_v42 = vpop.f32.mrf.mxu0  ;;  %v300_v49 = vpop.f32.mrf.mxu1 }
  0xe7   :  { %1331 = vpow2.f32 %v1229_v40  ;;  %v1230_v43 = vmul.f32 -1.442695, %v304_v41  ;;  %v1231_v54 = vmul.f32 -1.442695, %v306_v52  ;;  %v1232_v40 = vld [vmem:[%s2148_s0 + $0x10] sm:$0xff] }
  0xe8   :  { %v260_v46 = vpop.f32.mrf.mxu0  ;;  %v301_v51 = vpop.f32.mrf.mxu1  ;;  %v336_v41 = vunpack.c.l.bf16 %v1232_v40  ;;  %v337_v42 = vunpack.c.h.bf16 %v1232_v40 }
  0xe9   :  { %1333 = vpow2.f32 %v1230_v43 }
  0xea   :  { %1335 = vtanh.f32 %v305_v53 }
  0xeb   :  { %1337 = vpow2.f32 %v1231_v54 }
  0xf4   :  { %v1332_v55 = vpop.eup %1331 }
  0xf5   :  { %v310_v56 = vadd.f32 1.0, %v1332_v55  ;;  %v1233_v55 = vld [vmem:[%s2148_s0 + $0x18] sm:$0xff] }
  0xf6   :  { %v1334_v57 = vpop.eup %1333 }
  0xf7   :  { %1339 = vrcp.f32 %v310_v56  ;;  %v316_v58 = vadd.f32 1.0, %v1334_v57  ;;  %v1336_v59 = vpop.eup %1335  ;;  %v339_v56 = vunpack.c.h.bf16 %v1233_v55 }
  0xf8   :  { %v1338_v60 = vpop.eup %1337 }
  0xf9   :  { %1341 = vrcp.f32 %v316_v58  ;;  %v323_v63 = vadd.f32 1.0, %v1338_v60  ;;  %v338_v58 = vunpack.c.l.bf16 %v1233_v55 }
  0xfb   :  { %1343 = vrcp.f32 %v323_v63 }
 0x104   :  { %v1340_v61 = vpop.eup %1339 }
 0x105   :  { %v327_v34 = vmul.f32 %v1340_v61, %v1336_v59 }
 0x106   :  { %v1342_v62 = vpop.eup %1341 }
 0x107   :  { %v326_v33 = vmul.f32 0.0, %v1342_v62 }
 0x108   :  { %v1344_v36 = vpop.eup %1343 }
 0x109   :  { %v1749_v35 = vadd.f32 %v327_v34, %v326_v33 }
 0x10b   :  { %1345 = vtanh.f32 %v1749_v35  ;;  %332 = vst [vmem:[%s2149_s3] sm:$0xff] %v1749_v35 }
 0x118   :  { %v1346_v37 = vpop.eup %1345 }
 0x119   :  { %v330_v38 = vmul.f32 %v1346_v37, %v1344_v36 }
 0x11b   :  { %331 = vst [vmem:[%s2150_s2] sm:$0xff] %v330_v38  ;;  %v340_v39 = vpack.c.bf16 %v330_v38, %v330_v38 }
 0x11d   :  { %374 = vmatmul.mubr.bf16.vlgmr.msra.gmra.mxu0 %v340_v39  ;;  %415 = vmatmul.mubr.bf16.vlgmr.msra.gmra.mxu1 %v340_v39 }
 0x11e   :  { %464 = vmatpush1.bf16.msra.mxu0 %v1523_v2  ;;  %505 = vmatpush1.bf16.msra.mxu1 %v1551_v7 }
 0x11f   :  { %465 = vmatprep.subr.bf16.mxu0 %v1529_v3  ;;  %506 = vmatprep.subr.bf16.mxu1 %v1570_v10 }
 0x120   :  { %495 = vmatprep.mubr.bf16.mxu0 %v1491_v1  ;;  %536 = vmatprep.mubr.bf16.mxu1 %v1491_v1 }
 0x122   :  { %466 = vmatpush1.bf16.msra.mxu0 %v1535_v4  ;;  %507 = vmatpush1.bf16.msra.mxu1 %v1575_v11 }
 0x123   :  { %467 = vmatprep.subr.bf16.mxu0 %v1541_v5  ;;  %508 = vmatprep.subr.bf16.mxu1 %v1592_v14 }
 0x126   :  { %468 = vmatpush1.bf16.msra.mxu0 %v1557_v8  ;;  %509 = vmatpush1.bf16.msra.mxu1 %v1599_v15 }
 0x127   :  { %469 = vmatprep.subr.bf16.mxu0 %v1564_v9  ;;  %510 = vmatprep.subr.bf16.mxu1 %v1605_v16 }
 0x12a   :  { %470 = vmatpush1.bf16.msra.mxu0 %v1582_v12  ;;  %511 = vmatpush1.bf16.msra.mxu1 %v1623_v19 }
 0x12b   :  { %471 = vmatprep.subr.bf16.mxu0 %v1587_v13  ;;  %512 = vmatprep.subr.bf16.mxu1 %v1629_v20 }
 0x12e   :  { %472 = vmatpush1.bf16.msra.mxu0 %v1611_v17  ;;  %513 = vmatpush1.bf16.msra.mxu1 %v1647_v23 }
 0x12f   :  { %473 = vmatprep.subr.bf16.mxu0 %v1617_v18  ;;  %514 = vmatprep.subr.bf16.mxu1 %v1653_v24 }
 0x132   :  { %474 = vmatpush1.bf16.msra.mxu0 %v1635_v21  ;;  %515 = vmatpush1.bf16.msra.mxu1 %v1671_v27 }
 0x133   :  { %475 = vmatprep.subr.bf16.mxu0 %v1640_v22  ;;  %516 = vmatprep.subr.bf16.mxu1 %v1677_v28 }
 0x136   :  { %476 = vmatpush1.bf16.msra.mxu0 %v1659_v25  ;;  %517 = vmatpush1.bf16.msra.mxu1 %v1690_v30 }
 0x137   :  { %477 = vmatprep.subr.bf16.mxu0 %v1665_v26  ;;  %518 = vmatprep.subr.bf16.mxu1 %v1696_v31 }
 0x13a   :  { %478 = vmatpush1.bf16.msra.mxu0 %v1683_v29  ;;  %519 = vmatpush1.bf16.msra.mxu1 %v1703_v32 }
 0x13b   :  { %585 = vmatprep.subr.bf16.mxu0 %v1516_v0  ;;  %626 = vmatprep.subr.bf16.mxu1 %v1546_v6 }
 0x1dd   :  { %v375_v43 = vpop.f32.mrf.mxu0  ;;  %v416_v44 = vpop.f32.mrf.mxu1 }
 0x1de   :  { %v423_v45 = vadd.f32 %v375_v43, %v336_v41  ;;  %v425_v61 = vadd.f32 %v416_v44, %v338_v58 }
 0x1df   :  { %v377_v46 = vpop.f32.mrf.mxu0  ;;  %v418_v47 = vpop.f32.mrf.mxu1 }
 0x1e0   :  { %v1234_v48 = vmul.f32 -1.442695, %v423_v45  ;;  %v424_v49 = vadd.f32 %v377_v46, %v337_v42  ;;  %v426_v57 = vadd.f32 %v418_v47, %v339_v56 }
 0x1e1   :  { %v379_v50 = vpop.f32.mrf.mxu0  ;;  %v420_v51 = vpop.f32.mrf.mxu1 }
 0x1e2   :  { %1347 = vpow2.f32 %v1234_v48  ;;  %v1235_v52 = vmul.f32 -1.442695, %v424_v49  ;;  %v1236_v59 = vmul.f32 -1.442695, %v426_v57 }
 0x1e3   :  { %v380_v53 = vpop.f32.mrf.mxu0  ;;  %v421_v54 = vpop.f32.mrf.mxu1 }
 0x1e4   :  { %1349 = vpow2.f32 %v1235_v52 }
 0x1e5   :  { %1351 = vpow2.f32 %v1236_v59 }
 0x1ef   :  { %v1348_v60 = vpop.eup %1347 }
 0x1f0   :  { %v430_v62 = vadd.f32 1.0, %v1348_v60 }
 0x1f1   :  { %v1350_v63 = vpop.eup %1349 }
 0x1f2   :  { %1353 = vrcp.f32 %v430_v62  ;;  %v436_v33 = vadd.f32 1.0, %v1350_v63  ;;  %v1352_v34 = vpop.eup %1351 }
 0x1f3   :  { %1355 = vtanh.f32 %v425_v61  ;;  %v443_v39 = vadd.f32 1.0, %v1352_v34  ;;  %v1240_v61 = vld [vmem:[%s2148_s0 + $0x28] sm:$0xff] }
 0x1f4   :  { %1357 = vrcp.f32 %v436_v33  ;;  %v461_v62 = vunpack.c.h.bf16 %v1240_v61  ;;  %v460_v33 = vunpack.c.l.bf16 %v1240_v61 }
 0x1f5   :  { %1359 = vrcp.f32 %v443_v39 }
 0x1ff   :  { %v1354_v36 = vpop.eup %1353 }
 0x200   :  { %v1356_v37 = vpop.eup %1355 }
 0x201   :  { %v1358_v38 = vpop.eup %1357  ;;  %v447_v40 = vmul.f32 %v1356_v37, %v1354_v36 }
 0x202   :  { %v446_v41 = vmul.f32 %v1358_v38, %v1749_v35  ;;  %v1360_v43 = vpop.eup %1359  ;;  %v1239_v35 = vld [vmem:[%s2148_s0 + $0x20] sm:$0xff] }
 0x203   :  { %v458_v47 = vunpack.c.l.bf16 %v1239_v35  ;;  %v459_v48 = vunpack.c.h.bf16 %v1239_v35 }
 0x204   :  { %v1800_v42 = vadd.f32 %v447_v40, %v446_v41 }
 0x206   :  { %1238 = vst [vmem:[%s2149_s3 + $0x8] sm:$0xff] %v1800_v42  ;;  %1361 = vtanh.f32 %v1800_v42 }
 0x213   :  { %v1362_v44 = vpop.eup %1361 }
 0x214   :  { %v450_v45 = vmul.f32 %v1362_v44, %v1360_v43 }
 0x216   :  { %1237 = vst [vmem:[%s2150_s2 + $0x8] sm:$0xff] %v450_v45  ;;  %v462_v46 = vpack.c.bf16 %v450_v45, %v450_v45 }
 0x218   :  { %496 = vmatmul.mubr.bf16.vlgmr.msra.gmra.mxu0 %v462_v46  ;;  %537 = vmatmul.mubr.bf16.vlgmr.msra.gmra.mxu1 %v462_v46 }
 0x219   :  { %586 = vmatpush1.bf16.msra.mxu0 %v1523_v2  ;;  %627 = vmatpush1.bf16.msra.mxu1 %v1551_v7 }
 0x21a   :  { %587 = vmatprep.subr.bf16.mxu0 %v1529_v3  ;;  %628 = vmatprep.subr.bf16.mxu1 %v1570_v10 }
 0x21b   :  { %617 = vmatprep.mubr.bf16.mxu0 %v1491_v1  ;;  %658 = vmatprep.mubr.bf16.mxu1 %v1491_v1 }
 0x21d   :  { %588 = vmatpush1.bf16.msra.mxu0 %v1535_v4  ;;  %629 = vmatpush1.bf16.msra.mxu1 %v1575_v11 }
 0x21e   :  { %589 = vmatprep.subr.bf16.mxu0 %v1541_v5  ;;  %630 = vmatprep.subr.bf16.mxu1 %v1592_v14 }
 0x221   :  { %590 = vmatpush1.bf16.msra.mxu0 %v1557_v8  ;;  %631 = vmatpush1.bf16.msra.mxu1 %v1599_v15 }
 0x222   :  { %591 = vmatprep.subr.bf16.mxu0 %v1564_v9  ;;  %632 = vmatprep.subr.bf16.mxu1 %v1605_v16 }
 0x225   :  { %592 = vmatpush1.bf16.msra.mxu0 %v1582_v12  ;;  %633 = vmatpush1.bf16.msra.mxu1 %v1623_v19 }
 0x226   :  { %593 = vmatprep.subr.bf16.mxu0 %v1587_v13  ;;  %634 = vmatprep.subr.bf16.mxu1 %v1629_v20 }
 0x229   :  { %594 = vmatpush1.bf16.msra.mxu0 %v1611_v17  ;;  %635 = vmatpush1.bf16.msra.mxu1 %v1647_v23 }
 0x22a   :  { %595 = vmatprep.subr.bf16.mxu0 %v1617_v18  ;;  %636 = vmatprep.subr.bf16.mxu1 %v1653_v24 }
 0x22d   :  { %596 = vmatpush1.bf16.msra.mxu0 %v1635_v21  ;;  %637 = vmatpush1.bf16.msra.mxu1 %v1671_v27 }
 0x22e   :  { %597 = vmatprep.subr.bf16.mxu0 %v1640_v22  ;;  %638 = vmatprep.subr.bf16.mxu1 %v1677_v28 }
 0x231   :  { %598 = vmatpush1.bf16.msra.mxu0 %v1659_v25  ;;  %639 = vmatpush1.bf16.msra.mxu1 %v1690_v30 }
 0x232   :  { %599 = vmatprep.subr.bf16.mxu0 %v1665_v26  ;;  %640 = vmatprep.subr.bf16.mxu1 %v1696_v31 }
 0x235   :  { %600 = vmatpush1.bf16.msra.mxu0 %v1683_v29  ;;  %641 = vmatpush1.bf16.msra.mxu1 %v1703_v32 }
 0x236   :  { %707 = vmatprep.subr.bf16.mxu0 %v1516_v0  ;;  %748 = vmatprep.subr.bf16.mxu1 %v1546_v6 }
 0x2d8   :  { %v497_v49 = vpop.f32.mrf.mxu0  ;;  %v538_v50 = vpop.f32.mrf.mxu1 }
 0x2d9   :  { %v545_v51 = vadd.f32 %v497_v49, %v458_v47  ;;  %v547_v37 = vadd.f32 %v538_v50, %v460_v33 }
 0x2da   :  { %v499_v52 = vpop.f32.mrf.mxu0  ;;  %v540_v53 = vpop.f32.mrf.mxu1 }
 0x2db   :  { %v1241_v54 = vmul.f32 -1.442695, %v545_v51  ;;  %v546_v55 = vadd.f32 %v499_v52, %v459_v48  ;;  %v548_v63 = vadd.f32 %v540_v53, %v461_v62 }
 0x2dc   :  { %v501_v56 = vpop.f32.mrf.mxu0  ;;  %v542_v57 = vpop.f32.mrf.mxu1 }
 0x2dd   :  { %1363 = vpow2.f32 %v1241_v54  ;;  %v1242_v58 = vmul.f32 -1.442695, %v546_v55  ;;  %v1243_v34 = vmul.f32 -1.442695, %v548_v63 }
 0x2de   :  { %v502_v59 = vpop.f32.mrf.mxu0  ;;  %v543_v60 = vpop.f32.mrf.mxu1 }
 0x2df   :  { %1365 = vpow2.f32 %v1242_v58 }
 0x2e0   :  { %1367 = vpow2.f32 %v1243_v34 }
 0x2ea   :  { %v1364_v36 = vpop.eup %1363 }
 0x2eb   :  { %v552_v38 = vadd.f32 1.0, %v1364_v36 }
 0x2ec   :  { %v1366_v39 = vpop.eup %1365 }
 0x2ed   :  { %1369 = vrcp.f32 %v552_v38  ;;  %v558_v40 = vadd.f32 1.0, %v1366_v39  ;;  %v1368_v41 = vpop.eup %1367 }
 0x2ee   :  { %1371 = vtanh.f32 %v547_v37  ;;  %v565_v46 = vadd.f32 1.0, %v1368_v41  ;;  %v1247_v37 = vld [vmem:[%s2148_s0 + $0x38] sm:$0xff] }
 0x2ef   :  { %1373 = vrcp.f32 %v558_v40  ;;  %v583_v38 = vunpack.c.h.bf16 %v1247_v37  ;;  %v582_v40 = vunpack.c.l.bf16 %v1247_v37 }
 0x2f0   :  { %1375 = vrcp.f32 %v565_v46 }
 0x2fa   :  { %v1370_v43 = vpop.eup %1369 }
 0x2fb   :  { %v1372_v44 = vpop.eup %1371 }
 0x2fc   :  { %v1374_v45 = vpop.eup %1373  ;;  %v569_v35 = vmul.f32 %v1372_v44, %v1370_v43 }
 0x2fd   :  { %v568_v47 = vmul.f32 %v1374_v45, %v1800_v42  ;;  %v1376_v49 = vpop.eup %1375  ;;  %v1246_v42 = vld [vmem:[%s2148_s0 + $0x30] sm:$0xff] }
 0x2fe   :  { %v580_v53 = vunpack.c.l.bf16 %v1246_v42  ;;  %v581_v54 = vunpack.c.h.bf16 %v1246_v42 }
 0x2ff   :  { %v1851_v48 = vadd.f32 %v569_v35, %v568_v47 }
 0x301   :  { %1245 = vst [vmem:[%s2149_s3 + $0x10] sm:$0xff] %v1851_v48  ;;  %1377 = vtanh.f32 %v1851_v48 }
 0x30e   :  { %v1378_v50 = vpop.eup %1377 }
 0x30f   :  { %v572_v51 = vmul.f32 %v1378_v50, %v1376_v49 }
 0x311   :  { %1244 = vst [vmem:[%s2150_s2 + $0x10] sm:$0xff] %v572_v51  ;;  %v584_v52 = vpack.c.bf16 %v572_v51, %v572_v51 }
 0x313   :  { %618 = vmatmul.mubr.bf16.vlgmr.msra.gmra.mxu0 %v584_v52  ;;  %659 = vmatmul.mubr.bf16.vlgmr.msra.gmra.mxu1 %v584_v52 }
 0x314   :  { %708 = vmatpush1.bf16.msra.mxu0 %v1523_v2  ;;  %749 = vmatpush1.bf16.msra.mxu1 %v1551_v7 }
 0x315   :  { %709 = vmatprep.subr.bf16.mxu0 %v1529_v3  ;;  %750 = vmatprep.subr.bf16.mxu1 %v1570_v10 }
 0x316   :  { %739 = vmatprep.mubr.bf16.mxu0 %v1491_v1  ;;  %780 = vmatprep.mubr.bf16.mxu1 %v1491_v1 }
 0x318   :  { %710 = vmatpush1.bf16.msra.mxu0 %v1535_v4  ;;  %751 = vmatpush1.bf16.msra.mxu1 %v1575_v11 }
 0x319   :  { %711 = vmatprep.subr.bf16.mxu0 %v1541_v5  ;;  %752 = vmatprep.subr.bf16.mxu1 %v1592_v14 }
 0x31c   :  { %712 = vmatpush1.bf16.msra.mxu0 %v1557_v8  ;;  %753 = vmatpush1.bf16.msra.mxu1 %v1599_v15 }
 0x31d   :  { %713 = vmatprep.subr.bf16.mxu0 %v1564_v9  ;;  %754 = vmatprep.subr.bf16.mxu1 %v1605_v16 }
 0x320   :  { %714 = vmatpush1.bf16.msra.mxu0 %v1582_v12  ;;  %755 = vmatpush1.bf16.msra.mxu1 %v1623_v19 }
 0x321   :  { %715 = vmatprep.subr.bf16.mxu0 %v1587_v13  ;;  %756 = vmatprep.subr.bf16.mxu1 %v1629_v20 }
 0x324   :  { %716 = vmatpush1.bf16.msra.mxu0 %v1611_v17  ;;  %757 = vmatpush1.bf16.msra.mxu1 %v1647_v23 }
 0x325   :  { %717 = vmatprep.subr.bf16.mxu0 %v1617_v18  ;;  %758 = vmatprep.subr.bf16.mxu1 %v1653_v24 }
 0x328   :  { %718 = vmatpush1.bf16.msra.mxu0 %v1635_v21  ;;  %759 = vmatpush1.bf16.msra.mxu1 %v1671_v27 }
 0x329   :  { %719 = vmatprep.subr.bf16.mxu0 %v1640_v22  ;;  %760 = vmatprep.subr.bf16.mxu1 %v1677_v28 }
 0x32c   :  { %720 = vmatpush1.bf16.msra.mxu0 %v1659_v25  ;;  %761 = vmatpush1.bf16.msra.mxu1 %v1690_v30 }
 0x32d   :  { %721 = vmatprep.subr.bf16.mxu0 %v1665_v26  ;;  %762 = vmatprep.subr.bf16.mxu1 %v1696_v31 }
 0x330   :  { %722 = vmatpush1.bf16.msra.mxu0 %v1683_v29  ;;  %763 = vmatpush1.bf16.msra.mxu1 %v1703_v32 }
 0x331   :  { %829 = vmatprep.subr.bf16.mxu0 %v1516_v0  ;;  %870 = vmatprep.subr.bf16.mxu1 %v1546_v6 }
 0x3d3   :  { %v619_v55 = vpop.f32.mrf.mxu0  ;;  %v660_v56 = vpop.f32.mrf.mxu1 }
 0x3d4   :  { %v667_v57 = vadd.f32 %v619_v55, %v580_v53  ;;  %v669_v44 = vadd.f32 %v660_v56, %v582_v40 }
 0x3d5   :  { %v621_v58 = vpop.f32.mrf.mxu0  ;;  %v662_v59 = vpop.f32.mrf.mxu1 }
 0x3d6   :  { %v1248_v60 = vmul.f32 -1.442695, %v667_v57  ;;  %v668_v61 = vadd.f32 %v621_v58, %v581_v54  ;;  %v670_v39 = vadd.f32 %v662_v59, %v583_v38 }
 0x3d7   :  { %v623_v62 = vpop.f32.mrf.mxu0  ;;  %v664_v63 = vpop.f32.mrf.mxu1 }
 0x3d8   :  { %1379 = vpow2.f32 %v1248_v60  ;;  %v1249_v33 = vmul.f32 -1.442695, %v668_v61  ;;  %v1250_v41 = vmul.f32 -1.442695, %v670_v39 }
 0x3d9   :  { %v624_v34 = vpop.f32.mrf.mxu0  ;;  %v665_v36 = vpop.f32.mrf.mxu1 }
 0x3da   :  { %1381 = vpow2.f32 %v1249_v33 }
 0x3db   :  { %1383 = vpow2.f32 %v1250_v41 }
 0x3e5   :  { %v1380_v43 = vpop.eup %1379 }
 0x3e6   :  { %v674_v45 = vadd.f32 1.0, %v1380_v43 }
 0x3e7   :  { %v1382_v46 = vpop.eup %1381 }
 0x3e8   :  { %1385 = vrcp.f32 %v674_v45  ;;  %v680_v35 = vadd.f32 1.0, %v1382_v46  ;;  %v1384_v47 = vpop.eup %1383 }
 0x3e9   :  { %1387 = vtanh.f32 %v669_v44  ;;  %v687_v52 = vadd.f32 1.0, %v1384_v47 }
 0x3ea   :  { %1389 = vrcp.f32 %v680_v35 }
 0x3eb   :  { %1391 = vrcp.f32 %v687_v52 }
 0x3f5   :  { %v1386_v49 = vpop.eup %1385 }
 0x3f6   :  { %v1388_v50 = vpop.eup %1387 }
 0x3f7   :  { %v1390_v51 = vpop.eup %1389  ;;  %v691_v42 = vmul.f32 %v1388_v50, %v1386_v49 }
 0x3f8   :  { %v690_v53 = vmul.f32 %v1390_v51, %v1851_v48  ;;  %v1392_v55 = vpop.eup %1391 }
 0x3fa   :  { %v1902_v54 = vadd.f32 %v691_v42, %v690_v53 }
 0x3fc   :  { %1252 = vst [vmem:[%s2149_s3 + $0x18] sm:$0xff] %v1902_v54  ;;  %1393 = vtanh.f32 %v1902_v54 }
 0x409   :  { %v1394_v56 = vpop.eup %1393 }
 0x40a   :  { %v694_v57 = vmul.f32 %v1394_v56, %v1392_v55 }
 0x40c   :  { %1251 = vst [vmem:[%s2150_s2 + $0x18] sm:$0xff] %v694_v57  ;;  %v706_v58 = vpack.c.bf16 %v694_v57, %v694_v57 }
 0x40e   :  { %740 = vmatmul.mubr.bf16.vlgmr.msra.gmra.mxu0 %v706_v58  ;;  %781 = vmatmul.mubr.bf16.vlgmr.msra.gmra.mxu1 %v706_v58 }
 0x40f   :  { %830 = vmatpush1.bf16.msra.mxu0 %v1523_v2  ;;  %871 = vmatpush1.bf16.msra.mxu1 %v1551_v7  ;;  %v1253_v2 = vld [vmem:[%s2148_s0 + $0x40] sm:$0xff] }
 0x410   :  { %831 = vmatprep.subr.bf16.mxu0 %v1529_v3  ;;  %872 = vmatprep.subr.bf16.mxu1 %v1570_v10  ;;  %v702_v3 = vunpack.c.l.bf16 %v1253_v2 }
 0x411   :  { %861 = vmatprep.mubr.bf16.mxu0 %v1491_v1  ;;  %902 = vmatprep.mubr.bf16.mxu1 %v1491_v1 }
 0x413   :  { %832 = vmatpush1.bf16.msra.mxu0 %v1535_v4  ;;  %873 = vmatpush1.bf16.msra.mxu1 %v1575_v11  ;;  %v703_v4 = vunpack.c.h.bf16 %v1253_v2 }
 0x414   :  { %833 = vmatprep.subr.bf16.mxu0 %v1541_v5  ;;  %874 = vmatprep.subr.bf16.mxu1 %v1592_v14 }
 0x417   :  { %834 = vmatpush1.bf16.msra.mxu0 %v1557_v8  ;;  %875 = vmatpush1.bf16.msra.mxu1 %v1599_v15 }
 0x418   :  { %835 = vmatprep.subr.bf16.mxu0 %v1564_v9  ;;  %876 = vmatprep.subr.bf16.mxu1 %v1605_v16 }
 0x41b   :  { %836 = vmatpush1.bf16.msra.mxu0 %v1582_v12  ;;  %877 = vmatpush1.bf16.msra.mxu1 %v1623_v19 }
 0x41c   :  { %837 = vmatprep.subr.bf16.mxu0 %v1587_v13  ;;  %878 = vmatprep.subr.bf16.mxu1 %v1629_v20 }
 0x41f   :  { %838 = vmatpush1.bf16.msra.mxu0 %v1611_v17  ;;  %879 = vmatpush1.bf16.msra.mxu1 %v1647_v23 }
 0x420   :  { %839 = vmatprep.subr.bf16.mxu0 %v1617_v18  ;;  %880 = vmatprep.subr.bf16.mxu1 %v1653_v24 }
 0x423   :  { %840 = vmatpush1.bf16.msra.mxu0 %v1635_v21  ;;  %881 = vmatpush1.bf16.msra.mxu1 %v1671_v27 }
 0x424   :  { %841 = vmatprep.subr.bf16.mxu0 %v1640_v22  ;;  %882 = vmatprep.subr.bf16.mxu1 %v1677_v28 }
 0x427   :  { %842 = vmatpush1.bf16.msra.mxu0 %v1659_v25  ;;  %883 = vmatpush1.bf16.msra.mxu1 %v1690_v30 }
 0x428   :  { %843 = vmatprep.subr.bf16.mxu0 %v1665_v26  ;;  %884 = vmatprep.subr.bf16.mxu1 %v1696_v31 }
 0x42b   :  { %844 = vmatpush1.bf16.msra.mxu0 %v1683_v29  ;;  %885 = vmatpush1.bf16.msra.mxu1 %v1703_v32 }
 0x42c   :  { %951 = vmatprep.subr.bf16.mxu0 %v1516_v0  ;;  %992 = vmatprep.subr.bf16.mxu1 %v1546_v6  ;;  %v1254_v6 = vld [vmem:[%s2148_s0 + $0x48] sm:$0xff] }
 0x42d   :  { %v705_v38 = vunpack.c.h.bf16 %v1254_v6  ;;  %v704_v40 = vunpack.c.l.bf16 %v1254_v6 }
 0x4ce   :  { %v741_v5 = vpop.f32.mrf.mxu0  ;;  %v782_v48 = vpop.f32.mrf.mxu1 }
 0x4cf   :  { %v789_v59 = vadd.f32 %v741_v5, %v702_v3  ;;  %v791_v44 = vadd.f32 %v782_v48, %v704_v40  ;;  %v1973_v3 = vld [vmem:[%s2147_s1 + $0xc4] ss:$16 sps:$4 sm:$0xff]   ;;  %v1466_v40 = vld [vmem:[%s2147_s1 + $0xcc] ss:$16 sps:$4 sm:$0xff]  }
 0x4d0   :  { %v743_v60 = vpop.f32.mrf.mxu0  ;;  %v784_v61 = vpop.f32.mrf.mxu1 }
 0x4d1   :  { %v1255_v62 = vmul.f32 -1.442695, %v789_v59  ;;  %v790_v63 = vadd.f32 %v743_v60, %v703_v4  ;;  %v792_v39 = vadd.f32 %v784_v61, %v705_v38  ;;  %v1982_v4 = vld [vmem:[%s2147_s1 + $0xc0] ss:$16 sps:$4 sm:$0xff]  }
 0x4d2   :  { %v745_v33 = vpop.f32.mrf.mxu0  ;;  %v786_v34 = vpop.f32.mrf.mxu1 }
 0x4d3   :  { %1395 = vpow2.f32 %v1255_v62  ;;  %v1256_v36 = vmul.f32 -1.442695, %v790_v63  ;;  %v1257_v41 = vmul.f32 -1.442695, %v792_v39  ;;  %v1465_v39 = vld [vmem:[%s2147_s1 + $0xe8] ss:$16 sps:$4 sm:$0xff]  }
 0x4d4   :  { %v746_v0 = vpop.f32.mrf.mxu0  ;;  %v787_v37 = vpop.f32.mrf.mxu1 }
 0x4d5   :  { %1397 = vpow2.f32 %v1256_v36 }
 0x4d6   :  { %1399 = vpow2.f32 %v1257_v41  ;;  %v1467_v41 = vld [vmem:[%s2147_s1 + $0xc8] ss:$16 sps:$4 sm:$0xff]  }
 0x4e0   :  { %v1396_v43 = vpop.eup %1395 }
 0x4e1   :  { %v796_v45 = vadd.f32 1.0, %v1396_v43  ;;  %v1468_v43 = vld [vmem:[%s2147_s1 + $0xac] ss:$16 sps:$4 sm:$0xff]  }
 0x4e2   :  { %v1398_v46 = vpop.eup %1397 }
 0x4e3   :  { %1401 = vrcp.f32 %v796_v45  ;;  %v802_v35 = vadd.f32 1.0, %v1398_v46  ;;  %v1400_v47 = vpop.eup %1399  ;;  %v1471_v45 = vld [vmem:[%s2147_s1 + $0x84] ss:$16 sps:$4 sm:$0xff]   ;;  %v1472_v46 = vld [vmem:[%s2147_s1 + $0x8c] ss:$16 sps:$4 sm:$0xff]  }
 0x4e4   :  { %1403 = vtanh.f32 %v791_v44  ;;  %v809_v52 = vadd.f32 1.0, %v1400_v47  ;;  %v1469_v44 = vld [vmem:[%s2147_s1 + $0xa0] ss:$16 sps:$4 sm:$0xff]   ;;  %v1474_v47 = vld [vmem:[%s2147_s1 + $0x88] ss:$16 sps:$4 sm:$0xff]  }
 0x4e5   :  { %1405 = vrcp.f32 %v802_v35  ;;  %v1473_v35 = vld [vmem:[%s2147_s1 + $0x80] ss:$16 sps:$4 sm:$0xff]  }
 0x4e6   :  { %1407 = vrcp.f32 %v809_v52  ;;  %v1478_v52 = vld [vmem:[%s2147_s1 + $0x68] ss:$16 sps:$4 sm:$0xff]  }
 0x4f0   :  { %v1402_v49 = vpop.eup %1401 }
 0x4f1   :  { %v1404_v50 = vpop.eup %1403 }
 0x4f2   :  { %v1406_v51 = vpop.eup %1405  ;;  %v813_v42 = vmul.f32 %v1404_v50, %v1402_v49  ;;  %v1475_v49 = vld [vmem:[%s2147_s1 + $0x64] ss:$16 sps:$4 sm:$0xff]   ;;  %v1476_v50 = vld [vmem:[%s2147_s1 + $0x6c] ss:$16 sps:$4 sm:$0xff]  }
 0x4f3   :  { %v812_v53 = vmul.f32 %v1406_v51, %v1902_v54  ;;  %v1408_v56 = vpop.eup %1407  ;;  %v1966_v54 = vld [vmem:[%s2147_s1 + $0xe0] ss:$16 sps:$4 sm:$0xff]  }
 0x4f4   :  { %v1477_v51 = vld [vmem:[%s2147_s1 + $0x60] ss:$16 sps:$4 sm:$0xff]  }
 0x4f5   :  { %v1953_v55 = vadd.f32 %v813_v42, %v812_v53  ;;  %v1479_v42 = vld [vmem:[%s2147_s1 + $0x44] ss:$16 sps:$4 sm:$0xff]   ;;  %v1480_v53 = vld [vmem:[%s2147_s1 + $0x4c] ss:$16 sps:$4 sm:$0xff]  }
 0x4f7   :  { %1259 = vst [vmem:[%s2149_s3 + $0x20] sm:$0xff] %v1953_v55  ;;  %1409 = vtanh.f32 %v1953_v55 }
 0x504   :  { %v1410_v57 = vpop.eup %1409 }
 0x505   :  { %v816_v58 = vmul.f32 %v1410_v57, %v1408_v56  ;;  %v1482_v56 = vld [vmem:[%s2147_s1 + $0x48] ss:$16 sps:$4 sm:$0xff]   ;;  %v1483_v57 = vld [vmem:[%s2147_s1 + $0x24] ss:$16 sps:$4 sm:$0xff]  }
 0x507   :  { %1258 = vst [vmem:[%s2150_s2 + $0x20] sm:$0xff] %v816_v58  ;;  %v828_v2 = vpack.c.bf16 %v816_v58, %v816_v58  ;;  %v1484_v58 = vld [vmem:[%s2147_s1 + $0x2c] ss:$16 sps:$4 sm:$0xff]  }
 0x509   :  { %862 = vmatmul.mubr.bf16.vlgmr.msra.gmra.mxu0 %v828_v2  ;;  %903 = vmatmul.mubr.bf16.vlgmr.msra.gmra.mxu1 %v828_v2  ;;  %v1485_v2 = vld [vmem:[%s2147_s1 + $0x20] ss:$16 sps:$4 sm:$0xff]  }
 0x50a   :  { %952 = vmatpush1.bf16.msra.mxu0 %v1966_v54  ;;  %993 = vmatpush1.bf16.msra.mxu1 %v1551_v7  ;;  %v1989_v7 = vld [vmem:[%s2147_s1 + $0xa4] ss:$16 sps:$4 sm:$0xff]  }
 0x50b   :  { %953 = vmatprep.subr.bf16.mxu0 %v1973_v3  ;;  %994 = vmatprep.subr.bf16.mxu1 %v1570_v10  ;;  %v1260_v10 = vld [vmem:[%s2148_s0 + $0x50] sm:$0xff] }
 0x50c   :  { %983 = vmatprep.mubr.bf16.mxu0 %v1491_v1  ;;  %1024 = vmatprep.mubr.bf16.mxu1 %v1491_v1 }
 0x50e   :  { %954 = vmatpush1.bf16.msra.mxu0 %v1982_v4  ;;  %995 = vmatpush1.bf16.msra.mxu1 %v1575_v11  ;;  %v824_v11 = vunpack.c.l.bf16 %v1260_v10 }
 0x50f   :  { %955 = vmatprep.subr.bf16.mxu0 %v1989_v7  ;;  %996 = vmatprep.subr.bf16.mxu1 %v1592_v14 }
 0x512   :  { %956 = vmatpush1.bf16.msra.mxu0 %v1557_v8  ;;  %997 = vmatpush1.bf16.msra.mxu1 %v1599_v15  ;;  %v1463_v8 = vld [vmem:[%s2147_s1 + $0xe4] ss:$16 sps:$4 sm:$0xff]  }
 0x513   :  { %957 = vmatprep.subr.bf16.mxu0 %v1564_v9  ;;  %998 = vmatprep.subr.bf16.mxu1 %v1605_v16  ;;  %v1464_v9 = vld [vmem:[%s2147_s1 + $0xec] ss:$16 sps:$4 sm:$0xff]  }
 0x516   :  { %958 = vmatpush1.bf16.msra.mxu0 %v1582_v12  ;;  %999 = vmatpush1.bf16.msra.mxu1 %v1623_v19  ;;  %v825_v12 = vunpack.c.h.bf16 %v1260_v10 }
 0x517   :  { %959 = vmatprep.subr.bf16.mxu0 %v1587_v13  ;;  %1000 = vmatprep.subr.bf16.mxu1 %v1629_v20 }
 0x51a   :  { %960 = vmatpush1.bf16.msra.mxu0 %v1611_v17  ;;  %1001 = vmatpush1.bf16.msra.mxu1 %v1647_v23 }
 0x51b   :  { %961 = vmatprep.subr.bf16.mxu0 %v1617_v18  ;;  %1002 = vmatprep.subr.bf16.mxu1 %v1653_v24 }
 0x51e   :  { %962 = vmatpush1.bf16.msra.mxu0 %v1635_v21  ;;  %1003 = vmatpush1.bf16.msra.mxu1 %v1671_v27 }
 0x51f   :  { %963 = vmatprep.subr.bf16.mxu0 %v1640_v22  ;;  %1004 = vmatprep.subr.bf16.mxu1 %v1677_v28 }
 0x522   :  { %964 = vmatpush1.bf16.msra.mxu0 %v1659_v25  ;;  %1005 = vmatpush1.bf16.msra.mxu1 %v1690_v30  ;;  %v1261_v25 = vld [vmem:[%s2148_s0 + $0x58] sm:$0xff] }
 0x523   :  { %965 = vmatprep.subr.bf16.mxu0 %v1665_v26  ;;  %1006 = vmatprep.subr.bf16.mxu1 %v1696_v31  ;;  %v827_v26 = vunpack.c.h.bf16 %v1261_v25  ;;  %v826_v28 = vunpack.c.l.bf16 %v1261_v25 }
 0x526   :  { %966 = vmatpush1.bf16.msra.mxu0 %v1683_v29  ;;  %1007 = vmatpush1.bf16.msra.mxu1 %v1703_v32 }
 0x527   :  { %1073 = vmatprep.subr.bf16.mxu0 %v1463_v8  ;;  %1114 = vmatprep.subr.bf16.mxu1 %v1464_v9  ;;  %v1490_v8 = vld [vmem:[%s2147_s1 + $0x8] ss:$16 sps:$4 sm:$0xff]   ;;  %v1267_v9 = vld [vmem:[%s2148_s0 + $0x60] sm:$0xff] }
 0x528   :  { %v946_v10 = vunpack.c.l.bf16 %v1267_v9 }
 0x5c9   :  { %v863_v13 = vpop.f32.mrf.mxu0  ;;  %v904_v14 = vpop.f32.mrf.mxu1 }
 0x5ca   :  { %v911_v15 = vadd.f32 %v863_v13, %v824_v11  ;;  %v913_v31 = vadd.f32 %v904_v14, %v826_v28  ;;  %v947_v11 = vunpack.c.h.bf16 %v1267_v9 }
 0x5cb   :  { %v865_v16 = vpop.f32.mrf.mxu0  ;;  %v906_v17 = vpop.f32.mrf.mxu1 }
 0x5cc   :  { %v1262_v18 = vmul.f32 -1.442695, %v911_v15  ;;  %v912_v19 = vadd.f32 %v865_v16, %v825_v12  ;;  %v914_v27 = vadd.f32 %v906_v17, %v827_v26 }
 0x5cd   :  { %v867_v20 = vpop.f32.mrf.mxu0  ;;  %v908_v21 = vpop.f32.mrf.mxu1 }
 0x5ce   :  { %1411 = vpow2.f32 %v1262_v18  ;;  %v1263_v22 = vmul.f32 -1.442695, %v912_v19  ;;  %v1264_v29 = vmul.f32 -1.442695, %v914_v27 }
 0x5cf   :  { %v868_v23 = vpop.f32.mrf.mxu0  ;;  %v909_v24 = vpop.f32.mrf.mxu1 }
 0x5d0   :  { %1413 = vpow2.f32 %v1263_v22  ;;  %v1268_v24 = vld [vmem:[%s2148_s0 + $0x68] sm:$0xff] }
 0x5d1   :  { %1415 = vpow2.f32 %v1264_v29  ;;  %v949_v25 = vunpack.c.h.bf16 %v1268_v24  ;;  %v948_v27 = vunpack.c.l.bf16 %v1268_v24 }
 0x5db   :  { %v1412_v30 = vpop.eup %1411 }
 0x5dc   :  { %v918_v32 = vadd.f32 1.0, %v1412_v30 }
 0x5dd   :  { %v1414_v5 = vpop.eup %1413 }
 0x5de   :  { %1417 = vrcp.f32 %v918_v32  ;;  %v924_v48 = vadd.f32 1.0, %v1414_v5  ;;  %v1416_v59 = vpop.eup %1415 }
 0x5df   :  { %1419 = vtanh.f32 %v913_v31  ;;  %v931_v63 = vadd.f32 1.0, %v1416_v59 }
 0x5e0   :  { %1421 = vrcp.f32 %v924_v48 }
 0x5e1   :  { %1423 = vrcp.f32 %v931_v63 }
 0x5eb   :  { %v1418_v60 = vpop.eup %1417 }
 0x5ec   :  { %v1420_v61 = vpop.eup %1419 }
 0x5ed   :  { %v1422_v62 = vpop.eup %1421  ;;  %v935_v33 = vmul.f32 %v1420_v61, %v1418_v60 }
 0x5ee   :  { %v934_v34 = vmul.f32 %v1422_v62, %v1953_v55  ;;  %v1424_v0 = vpop.eup %1423  ;;  %v1481_v55 = vld [vmem:[%s2147_s1 + $0x40] ss:$16 sps:$4 sm:$0xff]  }
 0x5f0   :  { %v2028_v36 = vadd.f32 %v935_v33, %v934_v34 }
 0x5f2   :  { %1266 = vst [vmem:[%s2149_s3 + $0x28] sm:$0xff] %v2028_v36  ;;  %1425 = vtanh.f32 %v2028_v36 }
 0x5ff   :  { %v1426_v37 = vpop.eup %1425 }
 0x600   :  { %v938_v6 = vmul.f32 %v1426_v37, %v1424_v0 }
 0x602   :  { %1265 = vst [vmem:[%s2150_s2 + $0x28] sm:$0xff] %v938_v6  ;;  %v950_v38 = vpack.c.bf16 %v938_v6, %v938_v6 }
 0x604   :  { %984 = vmatmul.mubr.bf16.vlgmr.msra.gmra.mxu0 %v950_v38  ;;  %1025 = vmatmul.mubr.bf16.vlgmr.msra.gmra.mxu1 %v950_v38 }
 0x605   :  { %1074 = vmatpush1.bf16.msra.mxu0 %v1966_v54  ;;  %1115 = vmatpush1.bf16.msra.mxu1 %v1465_v39  ;;  %v1486_v54 = vld [vmem:[%s2147_s1 + $0x28] ss:$16 sps:$4 sm:$0xff]  }
 0x606   :  { %1075 = vmatprep.subr.bf16.mxu0 %v1973_v3  ;;  %1116 = vmatprep.subr.bf16.mxu1 %v1466_v40  ;;  %v1487_v3 = vld [vmem:[%s2147_s1 + $0x4] ss:$16 sps:$4 sm:$0xff]  }
 0x607   :  { %1105 = vmatprep.mubr.bf16.mxu0 %v1491_v1  ;;  %1146 = vmatprep.mubr.bf16.mxu1 %v1491_v1  ;;  %v1470_v1 = vld [vmem:[%s2147_s1 + $0xa8] ss:$16 sps:$4 sm:$0xff]  }
 0x609   :  { %1076 = vmatpush1.bf16.msra.mxu0 %v1982_v4  ;;  %1117 = vmatpush1.bf16.msra.mxu1 %v1467_v41  ;;  %v1488_v4 = vld [vmem:[%s2147_s1 + $0xc] ss:$16 sps:$4 sm:$0xff]  }
 0x60a   :  { %1077 = vmatprep.subr.bf16.mxu0 %v1989_v7  ;;  %1118 = vmatprep.subr.bf16.mxu1 %v1468_v43  ;;  %v1489_v7 = vld [vmem:[%s2147_s1] ss:$16 sps:$4 sm:$0xff]  }
 0x60d   :  { %1078 = vmatpush1.bf16.msra.mxu0 %v1469_v44  ;;  %1119 = vmatpush1.bf16.msra.mxu1 %v1470_v1 }
 0x60e   :  { %1079 = vmatprep.subr.bf16.mxu0 %v1471_v45  ;;  %1120 = vmatprep.subr.bf16.mxu1 %v1472_v46 }
 0x611   :  { %1080 = vmatpush1.bf16.msra.mxu0 %v1473_v35  ;;  %1121 = vmatpush1.bf16.msra.mxu1 %v1474_v47 }
 0x612   :  { %1081 = vmatprep.subr.bf16.mxu0 %v1475_v49  ;;  %1122 = vmatprep.subr.bf16.mxu1 %v1476_v50 }
 0x615   :  { %1082 = vmatpush1.bf16.msra.mxu0 %v1477_v51  ;;  %1123 = vmatpush1.bf16.msra.mxu1 %v1478_v52 }
 0x616   :  { %1083 = vmatprep.subr.bf16.mxu0 %v1479_v42  ;;  %1124 = vmatprep.subr.bf16.mxu1 %v1480_v53  ;;  %v1275_v42 = vld [vmem:[%s2148_s0 + $0x78] sm:$0xff] }
 0x617   :  { %v1071_v53 = vunpack.c.h.bf16 %v1275_v42 }
 0x619   :  { %1084 = vmatpush1.bf16.msra.mxu0 %v1481_v55  ;;  %1125 = vmatpush1.bf16.msra.mxu1 %v1482_v56  ;;  %v1070_v56 = vunpack.c.l.bf16 %v1275_v42 }
 0x61a   :  { %1085 = vmatprep.subr.bf16.mxu0 %v1483_v57  ;;  %1126 = vmatprep.subr.bf16.mxu1 %v1484_v58 }
 0x61d   :  { %1086 = vmatpush1.bf16.msra.mxu0 %v1485_v2  ;;  %1127 = vmatpush1.bf16.msra.mxu1 %v1486_v54 }
 0x61e   :  { %1087 = vmatprep.subr.bf16.mxu0 %v1487_v3  ;;  %1128 = vmatprep.subr.bf16.mxu1 %v1488_v4 }
 0x621   :  { %1088 = vmatpush1.bf16.msra.mxu0 %v1489_v7  ;;  %1129 = vmatpush1.bf16.msra.mxu1 %v1490_v8 }
 0x6c4   :  { %v985_v12 = vpop.f32.mrf.mxu0  ;;  %v1026_v13 = vpop.f32.mrf.mxu1 }
 0x6c5   :  { %v1033_v14 = vadd.f32 %v985_v12, %v946_v10  ;;  %v1035_v30 = vadd.f32 %v1026_v13, %v948_v27 }
 0x6c6   :  { %v987_v15 = vpop.f32.mrf.mxu0  ;;  %v1028_v16 = vpop.f32.mrf.mxu1 }
 0x6c7   :  { %v1269_v17 = vmul.f32 -1.442695, %v1033_v14  ;;  %v1034_v18 = vadd.f32 %v987_v15, %v947_v11  ;;  %v1036_v26 = vadd.f32 %v1028_v16, %v949_v25 }
 0x6c8   :  { %v989_v19 = vpop.f32.mrf.mxu0  ;;  %v1030_v20 = vpop.f32.mrf.mxu1 }
 0x6c9   :  { %1427 = vpow2.f32 %v1269_v17  ;;  %v1270_v21 = vmul.f32 -1.442695, %v1034_v18  ;;  %v1271_v28 = vmul.f32 -1.442695, %v1036_v26 }
 0x6ca   :  { %v990_v22 = vpop.f32.mrf.mxu0  ;;  %v1031_v23 = vpop.f32.mrf.mxu1 }
 0x6cb   :  { %1429 = vpow2.f32 %v1270_v21 }
 0x6cc   :  { %1431 = vpow2.f32 %v1271_v28 }
 0x6d6   :  { %v1428_v29 = vpop.eup %1427 }
 0x6d7   :  { %v1040_v31 = vadd.f32 1.0, %v1428_v29 }
 0x6d8   :  { %v1430_v32 = vpop.eup %1429 }
 0x6d9   :  { %1433 = vrcp.f32 %v1040_v31  ;;  %v1046_v5 = vadd.f32 1.0, %v1430_v32  ;;  %v1432_v48 = vpop.eup %1431 }
 0x6da   :  { %1435 = vtanh.f32 %v1035_v30  ;;  %v1053_v62 = vadd.f32 1.0, %v1432_v48 }
 0x6db   :  { %1437 = vrcp.f32 %v1046_v5 }
 0x6dc   :  { %1439 = vrcp.f32 %v1053_v62 }
 0x6e6   :  { %v1434_v59 = vpop.eup %1433 }
 0x6e7   :  { %v1436_v60 = vpop.eup %1435 }
 0x6e8   :  { %v1438_v61 = vpop.eup %1437  ;;  %v1057_v63 = vmul.f32 %v1436_v60, %v1434_v59 }
 0x6e9   :  { %v1056_v33 = vmul.f32 %v1438_v61, %v2028_v36  ;;  %v1440_v0 = vpop.eup %1439  ;;  %v1274_v36 = vld [vmem:[%s2148_s0 + $0x70] sm:$0xff] }
 0x6ea   :  { %v1068_v39 = vunpack.c.l.bf16 %v1274_v36  ;;  %v1069_v40 = vunpack.c.h.bf16 %v1274_v36 }
 0x6eb   :  { %v1058_v34 = vadd.f32 %v1057_v63, %v1056_v33 }
 0x6ed   :  { %1273 = vst [vmem:[%s2149_s3 + $0x30] sm:$0xff] %v1058_v34  ;;  %1441 = vtanh.f32 %v1058_v34 }
 0x6fa   :  { %v1442_v37 = vpop.eup %1441 }
 0x6fb   :  { %v1060_v6 = vmul.f32 %v1442_v37, %v1440_v0 }
 0x6fd   :  { %1272 = vst [vmem:[%s2150_s2 + $0x30] sm:$0xff] %v1060_v6  ;;  %v1072_v38 = vpack.c.bf16 %v1060_v6, %v1060_v6 }
 0x6ff   :  { %1106 = vmatmul.mubr.bf16.vlgmr.msra.gmra.mxu0 %v1072_v38  ;;  %1147 = vmatmul.mubr.bf16.vlgmr.msra.gmra.mxu1 %v1072_v38 }
 0x7bf   :  { %v1107_v41 = vpop.f32.mrf.mxu0  ;;  %v1148_v43 = vpop.f32.mrf.mxu1 }
 0x7c0   :  { %v1155_v44 = vadd.f32 %v1107_v41, %v1068_v39  ;;  %v1157_v2 = vadd.f32 %v1148_v43, %v1070_v56 }
 0x7c1   :  { %v1109_v1 = vpop.f32.mrf.mxu0  ;;  %v1150_v45 = vpop.f32.mrf.mxu1 }
 0x7c2   :  { %v1276_v46 = vmul.f32 -1.442695, %v1155_v44  ;;  %v1156_v35 = vadd.f32 %v1109_v1, %v1069_v40  ;;  %v1158_v55 = vadd.f32 %v1150_v45, %v1071_v53 }
 0x7c3   :  { %v1111_v47 = vpop.f32.mrf.mxu0  ;;  %v1152_v49 = vpop.f32.mrf.mxu1 }
 0x7c4   :  { %1443 = vpow2.f32 %v1276_v46  ;;  %v1277_v50 = vmul.f32 -1.442695, %v1156_v35  ;;  %v1278_v57 = vmul.f32 -1.442695, %v1158_v55 }
 0x7c5   :  { %v1112_v51 = vpop.f32.mrf.mxu0  ;;  %v1153_v52 = vpop.f32.mrf.mxu1 }
 0x7c6   :  { %1445 = vpow2.f32 %v1277_v50 }
 0x7c7   :  { %1447 = vpow2.f32 %v1278_v57 }
 0x7d1   :  { %v1444_v58 = vpop.eup %1443 }
 0x7d2   :  { %v1162_v54 = vadd.f32 1.0, %v1444_v58 }
 0x7d3   :  { %v1446_v3 = vpop.eup %1445 }
 0x7d4   :  { %1449 = vrcp.f32 %v1162_v54  ;;  %v1168_v4 = vadd.f32 1.0, %v1446_v3  ;;  %v1448_v7 = vpop.eup %1447 }
 0x7d5   :  { %1451 = vtanh.f32 %v1157_v2  ;;  %v1175_v11 = vadd.f32 1.0, %v1448_v7 }
 0x7d6   :  { %1453 = vrcp.f32 %v1168_v4 }
 0x7d7   :  { %1455 = vrcp.f32 %v1175_v11 }
 0x7e1   :  { %v1450_v8 = vpop.eup %1449 }
 0x7e2   :  { %v1452_v9 = vpop.eup %1451 }
 0x7e3   :  { %v1454_v10 = vpop.eup %1453  ;;  %v1179_v12 = vmul.f32 %v1452_v9, %v1450_v8 }
 0x7e4   :  { %v1178_v13 = vmul.f32 %v1454_v10, %v1058_v34  ;;  %v1456_v15 = vpop.eup %1455 }
 0x7e6   :  { %v1180_v14 = vadd.f32 %v1179_v12, %v1178_v13 }
 0x7e8   :  { %1457 = vtanh.f32 %v1180_v14  ;;  %1280 = vst [vmem:[%s2149_s3 + $0x38] sm:$0xff] %v1180_v14 }
 0x7f5   :  { %v1458_v16 = vpop.eup %1457 }
 0x7f6   :  { %v1182_v17 = vmul.f32 %v1458_v16, %v1456_v15 }
 0x7f8   :  { %1279 = vst [vmem:[%s2150_s2 + $0x38] sm:$0xff] %v1182_v17 }

</bundles_post_ra>
